<compile_context>
chip_gen: v5e
topology: v5e:2x2
jax: 0.10.0
libtpu: 0.0.40
codegen_flags: <defaults>
</compile_context>

<pallas_src>
import functools

import jax
import jax.numpy as jnp
from jax.experimental import pallas as pl
from jax.experimental.pallas import tpu as pltpu


NEG_SLOPE = 0.1
BLOCK_NUM = 3
N_LAYERS = 1 + 2 * BLOCK_NUM + 2   # in_mlp + 3 blocks x 2 + out_mlp x 2 = 9
LANE = 128                         # pad every channel dim to 128 lanes


def _leaky(x):
    # LeakyReLU(0.1) == max(x, 0.1*x) since 0 < slope < 1
    return jnp.maximum(x, NEG_SLOPE * x)


def _round_up(n, m):
    return (n + m - 1) // m * m


def mlp_resblock_kernel(x_ref, w_ref, b_ref, out_ref):
    """x_ref: (TILE_B, F) f32; w_ref: (N_LAYERS, F, F) bf16;
    b_ref: (N_LAYERS, 1, F) f32; out_ref: (TILE_B, F) f32."""

    def lin(h, layer):
        # bf16 x bf16 MXU matmul, f32 accumulate, f32 bias add.
        return (
            jnp.dot(h.astype(jnp.bfloat16), w_ref[layer],
                    preferred_element_type=jnp.float32)
            + b_ref[layer]
        )

    # in_mlp: Linear + LeakyReLU
    h = _leaky(lin(x_ref[...], 0))

    # residual blocks: Linear -> LeakyReLU -> Linear, add skip, LeakyReLU
    layer = 1
    for _ in range(BLOCK_NUM):
        h0 = h
        h = lin(_leaky(lin(h, layer)), layer + 1)
        layer += 2
        h = _leaky(h + h0)

    # out_mlp: Linear -> LeakyReLU -> Linear
    h = lin(_leaky(lin(h, layer)), layer + 1)
    out_ref[...] = h.astype(out_ref.dtype)


def mlp_resblock_forward(x, w_stack, b_stack, *, tile_b=256):
    """x: (B, F) f32 lane-padded; w_stack: (N_LAYERS, F, F) bf16;
    b_stack: (N_LAYERS, 1, F) f32. Returns (B, F) f32 (padded lanes are 0)."""
    B, F = x.shape
    assert w_stack.shape == (N_LAYERS, F, F)
    assert b_stack.shape == (N_LAYERS, 1, F)

    b_pad = _round_up(B, tile_b)
    if b_pad != B:
        x = jnp.pad(x, ((0, b_pad - B), (0, 0)))
    grid = (b_pad // tile_b,)

    out = pl.pallas_call(
        mlp_resblock_kernel,
        out_shape=jax.ShapeDtypeStruct((b_pad, F), jnp.float32),
        grid=grid,
        in_specs=[
            # batch-tiled activation input (pipelined across grid steps)
            pl.BlockSpec((tile_b, F), lambda i: (i, 0)),
            # packed weights / biases: constant block index -> VMEM-resident,
            # DMA'd once, not re-fetched per batch tile
            pl.BlockSpec((N_LAYERS, F, F), lambda i: (0, 0, 0)),
            pl.BlockSpec((N_LAYERS, 1, F), lambda i: (0, 0, 0)),
        ],
        out_specs=pl.BlockSpec((tile_b, F), lambda i: (i, 0)),
        compiler_params=pltpu.CompilerParams(
            dimension_semantics=("parallel",)),
    )(x, w_stack, b_stack)
    return out[:B]


# ----------------------------- parameters ---------------------------------

def init_linear(key, fan_in, fan_out):
    """PyTorch-default-style uniform(-1/sqrt(fan_in), 1/sqrt(fan_in))."""
    kw, kb = jax.random.split(key)
    bound = 1.0 / (fan_in ** 0.5)
    w = jax.random.uniform(kw, (fan_in, fan_out), jnp.float32, -bound, bound)
    b = jax.random.uniform(kb, (fan_out,), jnp.float32, -bound, bound)
    return w, b


def init_params(key, in_ch, ch, out_ch):
    dims = ([(in_ch, ch)]
            + [(ch, ch)] * (2 * BLOCK_NUM)
            + [(ch, ch), (ch, out_ch)])
    keys = jax.random.split(key, N_LAYERS)
    return [init_linear(k, fi, fo) for k, (fi, fo) in zip(keys, dims)]


def pack_params(params, f_pad):
    """Zero-pad every layer to (f_pad, f_pad) and stack into single tensors."""
    ws, bs = [], []
    for w, b in params:
        fi, fo = w.shape
        wp = jnp.zeros((f_pad, f_pad), jnp.float32).at[:fi, :fo].set(w)
        bp = jnp.zeros((1, f_pad), jnp.float32).at[0, :fo].set(b)
        ws.append(wp)
        bs.append(bp)
    w_stack = jnp.stack(ws).astype(jnp.bfloat16)   # MXU inputs in bf16
    b_stack = jnp.stack(bs)                        # bias add stays f32
    return w_stack, b_stack


# ----------------------------- reference ----------------------------------

def reference_forward(x, params):
    """Pure-JAX reference replicating the PyTorch forward, emulating the
    kernel's bf16-input / f32-accumulate matmuls."""
    def lin(h, w, b):
        hb = h.astype(jnp.bfloat16).astype(jnp.float32)
        wb = w.astype(jnp.bfloat16).astype(jnp.float32)
        return hb @ wb + b

    h = _leaky(lin(x, *params[0]))
    idx = 1
    for _ in range(BLOCK_NUM):
        (wa, ba), (wb_, bb) = params[idx], params[idx + 1]
        idx += 2
        h0 = h
        h = lin(_leaky(lin(h, wa, ba)), wb_, bb)
        h = _leaky(h + h0)
    h = lin(_leaky(lin(h, *params[idx])), *params[idx + 1])
    return h


if __name__ == "__main__":
    B, IN_CH, CH, OUT_CH = 512, 16, 32, 8
    TILE_B = 256

    key = jax.random.PRNGKey(0)
    kx, kp = jax.random.split(key)
    x = jax.random.normal(kx, (B, IN_CH), jnp.float32)
    params = init_params(kp, IN_CH, CH, OUT_CH)

    # lane-dense padded inputs
    w_stack, b_stack = pack_params(params, LANE)
    x_pad = jnp.zeros((B, LANE), jnp.float32).at[:, :IN_CH].set(x)

    fwd = jax.jit(functools.partial(mlp_resblock_forward, tile_b=TILE_B))
    out_full = jax.block_until_ready(fwd(x_pad, w_stack, b_stack))
    out = out_full[:, :OUT_CH]

    ref = reference_forward(x, params)
    assert out.shape == (B, OUT_CH)
    # padded lanes must stay exactly zero through the residual chain
    assert jnp.all(out_full[:, OUT_CH:] == 0.0), "padded lanes polluted"
    assert jnp.allclose(out, ref, atol=1e-3, rtol=1e-3), "mismatch vs reference"

    print("KERNEL_OK")
</pallas_src>

<mosaic_0001>
module attributes {stable_mosaic.version = 11 : i64} {
  func.func @mlp_resblock_kernel(%arg0: i32, %arg1: memref<256x128xf32, #tpu.memory_space<vmem>>, %arg2: memref<9x128x128xbf16, #tpu.memory_space<vmem>>, %arg3: memref<9x1x128xf32, #tpu.memory_space<vmem>>, %arg4: memref<256x128xf32, #tpu.memory_space<vmem>>) attributes {dimension_semantics = [#tpu.dimension_semantics<parallel>], iteration_bounds = array<i64: 2>, scalar_prefetch = 0 : i64, scratch_operands = 0 : i64, tpu.core_type = #tpu.core_type<tc>, window_params = [{transform_indices = @transform_0, window_bounds = array<i64: 256, 128>}, {pipeline_mode = #tpu.pipeline_mode<synchronous>, transform_indices = @transform_1, window_bounds = array<i64: 9, 128, 128>}, {pipeline_mode = #tpu.pipeline_mode<synchronous>, transform_indices = @transform_2, window_bounds = array<i64: 9, 1, 128>}, {transform_indices = @transform_3, window_bounds = array<i64: 256, 128>}]} {
    %c0 = arith.constant 0 : index
    %c0_0 = arith.constant 0 : index
    %0 = vector.load %arg1[%c0, %c0_0] : memref<256x128xf32, #tpu.memory_space<vmem>>, vector<256x128xf32>
    %1 = arith.truncf %0 : vector<256x128xf32> to vector<256x128xbf16>
    %c0_1 = arith.constant 0 : index
    %c0_2 = arith.constant 0 : index
    %c0_3 = arith.constant 0 : index
    %2 = vector.load %arg2[%c0_1, %c0_2, %c0_3] : memref<9x128x128xbf16, #tpu.memory_space<vmem>>, vector<1x128x128xbf16>
    %3 = vector.shape_cast %2 : vector<1x128x128xbf16> to vector<128x128xbf16>
    %cst = arith.constant dense<0.000000e+00> : vector<256x128xf32>
    %4 = tpu.matmul %1, %3, %cst {dimension_numbers = #tpu.dot_dimension_numbers<[1], [0], [0], [1], [0, 0, 1, 1], [], []>} : vector<256x128xbf16>, vector<128x128xbf16>, vector<256x128xf32> -> vector<256x128xf32>
    %c0_4 = arith.constant 0 : index
    %c0_5 = arith.constant 0 : index
    %c0_6 = arith.constant 0 : index
    %5 = vector.load %arg3[%c0_4, %c0_5, %c0_6] : memref<9x1x128xf32, #tpu.memory_space<vmem>>, vector<1x1x128xf32>
    %6 = vector.shape_cast %5 : vector<1x1x128xf32> to vector<1x128xf32>
    %7 = vector.broadcast %6 : vector<1x128xf32> to vector<256x128xf32>
    %8 = arith.addf %4, %7 : vector<256x128xf32>
    %cst_7 = arith.constant 1.000000e-01 : f32
    %9 = vector.broadcast %cst_7 : f32 to vector<256x128xf32>
    %10 = arith.mulf %9, %8 : vector<256x128xf32>
    %11 = arith.maximumf %8, %10 : vector<256x128xf32>
    %12 = arith.truncf %11 : vector<256x128xf32> to vector<256x128xbf16>
    %c1 = arith.constant 1 : index
    %c0_8 = arith.constant 0 : index
    %c0_9 = arith.constant 0 : index
    %13 = vector.load %arg2[%c1, %c0_8, %c0_9] : memref<9x128x128xbf16, #tpu.memory_space<vmem>>, vector<1x128x128xbf16>
    %14 = vector.shape_cast %13 : vector<1x128x128xbf16> to vector<128x128xbf16>
    %cst_10 = arith.constant dense<0.000000e+00> : vector<256x128xf32>
    %15 = tpu.matmul %12, %14, %cst_10 {dimension_numbers = #tpu.dot_dimension_numbers<[1], [0], [0], [1], [0, 0, 1, 1], [], []>} : vector<256x128xbf16>, vector<128x128xbf16>, vector<256x128xf32> -> vector<256x128xf32>
    %c1_11 = arith.constant 1 : index
    %c0_12 = arith.constant 0 : index
    %c0_13 = arith.constant 0 : index
    %16 = vector.load %arg3[%c1_11, %c0_12, %c0_13] : memref<9x1x128xf32, #tpu.memory_space<vmem>>, vector<1x1x128xf32>
    %17 = vector.shape_cast %16 : vector<1x1x128xf32> to vector<1x128xf32>
    %18 = vector.broadcast %17 : vector<1x128xf32> to vector<256x128xf32>
    %19 = arith.addf %15, %18 : vector<256x128xf32>
    %cst_14 = arith.constant 1.000000e-01 : f32
    %20 = vector.broadcast %cst_14 : f32 to vector<256x128xf32>
    %21 = arith.mulf %20, %19 : vector<256x128xf32>
    %22 = arith.maximumf %19, %21 : vector<256x128xf32>
    %23 = arith.truncf %22 : vector<256x128xf32> to vector<256x128xbf16>
    %c2 = arith.constant 2 : index
    %c0_15 = arith.constant 0 : index
    %c0_16 = arith.constant 0 : index
    %24 = vector.load %arg2[%c2, %c0_15, %c0_16] : memref<9x128x128xbf16, #tpu.memory_space<vmem>>, vector<1x128x128xbf16>
    %25 = vector.shape_cast %24 : vector<1x128x128xbf16> to vector<128x128xbf16>
    %cst_17 = arith.constant dense<0.000000e+00> : vector<256x128xf32>
    %26 = tpu.matmul %23, %25, %cst_17 {dimension_numbers = #tpu.dot_dimension_numbers<[1], [0], [0], [1], [0, 0, 1, 1], [], []>} : vector<256x128xbf16>, vector<128x128xbf16>, vector<256x128xf32> -> vector<256x128xf32>
    %c2_18 = arith.constant 2 : index
    %c0_19 = arith.constant 0 : index
    %c0_20 = arith.constant 0 : index
    %27 = vector.load %arg3[%c2_18, %c0_19, %c0_20] : memref<9x1x128xf32, #tpu.memory_space<vmem>>, vector<1x1x128xf32>
    %28 = vector.shape_cast %27 : vector<1x1x128xf32> to vector<1x128xf32>
    %29 = vector.broadcast %28 : vector<1x128xf32> to vector<256x128xf32>
    %30 = arith.addf %26, %29 : vector<256x128xf32>
    %31 = arith.addf %30, %11 : vector<256x128xf32>
    %cst_21 = arith.constant 1.000000e-01 : f32
    %32 = vector.broadcast %cst_21 : f32 to vector<256x128xf32>
    %33 = arith.mulf %32, %31 : vector<256x128xf32>
    %34 = arith.maximumf %31, %33 : vector<256x128xf32>
    %35 = arith.truncf %34 : vector<256x128xf32> to vector<256x128xbf16>
    %c3 = arith.constant 3 : index
    %c0_22 = arith.constant 0 : index
    %c0_23 = arith.constant 0 : index
    %36 = vector.load %arg2[%c3, %c0_22, %c0_23] : memref<9x128x128xbf16, #tpu.memory_space<vmem>>, vector<1x128x128xbf16>
    %37 = vector.shape_cast %36 : vector<1x128x128xbf16> to vector<128x128xbf16>
    %cst_24 = arith.constant dense<0.000000e+00> : vector<256x128xf32>
    %38 = tpu.matmul %35, %37, %cst_24 {dimension_numbers = #tpu.dot_dimension_numbers<[1], [0], [0], [1], [0, 0, 1, 1], [], []>} : vector<256x128xbf16>, vector<128x128xbf16>, vector<256x128xf32> -> vector<256x128xf32>
    %c3_25 = arith.constant 3 : index
    %c0_26 = arith.constant 0 : index
    %c0_27 = arith.constant 0 : index
    %39 = vector.load %arg3[%c3_25, %c0_26, %c0_27] : memref<9x1x128xf32, #tpu.memory_space<vmem>>, vector<1x1x128xf32>
    %40 = vector.shape_cast %39 : vector<1x1x128xf32> to vector<1x128xf32>
    %41 = vector.broadcast %40 : vector<1x128xf32> to vector<256x128xf32>
    %42 = arith.addf %38, %41 : vector<256x128xf32>
    %cst_28 = arith.constant 1.000000e-01 : f32
    %43 = vector.broadcast %cst_28 : f32 to vector<256x128xf32>
    %44 = arith.mulf %43, %42 : vector<256x128xf32>
    %45 = arith.maximumf %42, %44 : vector<256x128xf32>
    %46 = arith.truncf %45 : vector<256x128xf32> to vector<256x128xbf16>
    %c4 = arith.constant 4 : index
    %c0_29 = arith.constant 0 : index
    %c0_30 = arith.constant 0 : index
    %47 = vector.load %arg2[%c4, %c0_29, %c0_30] : memref<9x128x128xbf16, #tpu.memory_space<vmem>>, vector<1x128x128xbf16>
    %48 = vector.shape_cast %47 : vector<1x128x128xbf16> to vector<128x128xbf16>
    %cst_31 = arith.constant dense<0.000000e+00> : vector<256x128xf32>
    %49 = tpu.matmul %46, %48, %cst_31 {dimension_numbers = #tpu.dot_dimension_numbers<[1], [0], [0], [1], [0, 0, 1, 1], [], []>} : vector<256x128xbf16>, vector<128x128xbf16>, vector<256x128xf32> -> vector<256x128xf32>
    %c4_32 = arith.constant 4 : index
    %c0_33 = arith.constant 0 : index
    %c0_34 = arith.constant 0 : index
    %50 = vector.load %arg3[%c4_32, %c0_33, %c0_34] : memref<9x1x128xf32, #tpu.memory_space<vmem>>, vector<1x1x128xf32>
    %51 = vector.shape_cast %50 : vector<1x1x128xf32> to vector<1x128xf32>
    %52 = vector.broadcast %51 : vector<1x128xf32> to vector<256x128xf32>
    %53 = arith.addf %49, %52 : vector<256x128xf32>
    %54 = arith.addf %53, %34 : vector<256x128xf32>
    %cst_35 = arith.constant 1.000000e-01 : f32
    %55 = vector.broadcast %cst_35 : f32 to vector<256x128xf32>
    %56 = arith.mulf %55, %54 : vector<256x128xf32>
    %57 = arith.maximumf %54, %56 : vector<256x128xf32>
    %58 = arith.truncf %57 : vector<256x128xf32> to vector<256x128xbf16>
    %c5 = arith.constant 5 : index
    %c0_36 = arith.constant 0 : index
    %c0_37 = arith.constant 0 : index
    %59 = vector.load %arg2[%c5, %c0_36, %c0_37] : memref<9x128x128xbf16, #tpu.memory_space<vmem>>, vector<1x128x128xbf16>
    %60 = vector.shape_cast %59 : vector<1x128x128xbf16> to vector<128x128xbf16>
    %cst_38 = arith.constant dense<0.000000e+00> : vector<256x128xf32>
    %61 = tpu.matmul %58, %60, %cst_38 {dimension_numbers = #tpu.dot_dimension_numbers<[1], [0], [0], [1], [0, 0, 1, 1], [], []>} : vector<256x128xbf16>, vector<128x128xbf16>, vector<256x128xf32> -> vector<256x128xf32>
    %c5_39 = arith.constant 5 : index
    %c0_40 = arith.constant 0 : index
    %c0_41 = arith.constant 0 : index
    %62 = vector.load %arg3[%c5_39, %c0_40, %c0_41] : memref<9x1x128xf32, #tpu.memory_space<vmem>>, vector<1x1x128xf32>
    %63 = vector.shape_cast %62 : vector<1x1x128xf32> to vector<1x128xf32>
    %64 = vector.broadcast %63 : vector<1x128xf32> to vector<256x128xf32>
    %65 = arith.addf %61, %64 : vector<256x128xf32>
    %cst_42 = arith.constant 1.000000e-01 : f32
    %66 = vector.broadcast %cst_42 : f32 to vector<256x128xf32>
    %67 = arith.mulf %66, %65 : vector<256x128xf32>
    %68 = arith.maximumf %65, %67 : vector<256x128xf32>
    %69 = arith.truncf %68 : vector<256x128xf32> to vector<256x128xbf16>
    %c6 = arith.constant 6 : index
    %c0_43 = arith.constant 0 : index
    %c0_44 = arith.constant 0 : index
    %70 = vector.load %arg2[%c6, %c0_43, %c0_44] : memref<9x128x128xbf16, #tpu.memory_space<vmem>>, vector<1x128x128xbf16>
    %71 = vector.shape_cast %70 : vector<1x128x128xbf16> to vector<128x128xbf16>
    %cst_45 = arith.constant dense<0.000000e+00> : vector<256x128xf32>
    %72 = tpu.matmul %69, %71, %cst_45 {dimension_numbers = #tpu.dot_dimension_numbers<[1], [0], [0], [1], [0, 0, 1, 1], [], []>} : vector<256x128xbf16>, vector<128x128xbf16>, vector<256x128xf32> -> vector<256x128xf32>
    %c6_46 = arith.constant 6 : index
    %c0_47 = arith.constant 0 : index
    %c0_48 = arith.constant 0 : index
    %73 = vector.load %arg3[%c6_46, %c0_47, %c0_48] : memref<9x1x128xf32, #tpu.memory_space<vmem>>, vector<1x1x128xf32>
    %74 = vector.shape_cast %73 : vector<1x1x128xf32> to vector<1x128xf32>
    %75 = vector.broadcast %74 : vector<1x128xf32> to vector<256x128xf32>
    %76 = arith.addf %72, %75 : vector<256x128xf32>
    %77 = arith.addf %76, %57 : vector<256x128xf32>
    %cst_49 = arith.constant 1.000000e-01 : f32
    %78 = vector.broadcast %cst_49 : f32 to vector<256x128xf32>
    %79 = arith.mulf %78, %77 : vector<256x128xf32>
    %80 = arith.maximumf %77, %79 : vector<256x128xf32>
    %81 = arith.truncf %80 : vector<256x128xf32> to vector<256x128xbf16>
    %c7 = arith.constant 7 : index
    %c0_50 = arith.constant 0 : index
    %c0_51 = arith.constant 0 : index
    %82 = vector.load %arg2[%c7, %c0_50, %c0_51] : memref<9x128x128xbf16, #tpu.memory_space<vmem>>, vector<1x128x128xbf16>
    %83 = vector.shape_cast %82 : vector<1x128x128xbf16> to vector<128x128xbf16>
    %cst_52 = arith.constant dense<0.000000e+00> : vector<256x128xf32>
    %84 = tpu.matmul %81, %83, %cst_52 {dimension_numbers = #tpu.dot_dimension_numbers<[1], [0], [0], [1], [0, 0, 1, 1], [], []>} : vector<256x128xbf16>, vector<128x128xbf16>, vector<256x128xf32> -> vector<256x128xf32>
    %c7_53 = arith.constant 7 : index
    %c0_54 = arith.constant 0 : index
    %c0_55 = arith.constant 0 : index
    %85 = vector.load %arg3[%c7_53, %c0_54, %c0_55] : memref<9x1x128xf32, #tpu.memory_space<vmem>>, vector<1x1x128xf32>
    %86 = vector.shape_cast %85 : vector<1x1x128xf32> to vector<1x128xf32>
    %87 = vector.broadcast %86 : vector<1x128xf32> to vector<256x128xf32>
    %88 = arith.addf %84, %87 : vector<256x128xf32>
    %cst_56 = arith.constant 1.000000e-01 : f32
    %89 = vector.broadcast %cst_56 : f32 to vector<256x128xf32>
    %90 = arith.mulf %89, %88 : vector<256x128xf32>
    %91 = arith.maximumf %88, %90 : vector<256x128xf32>
    %92 = arith.truncf %91 : vector<256x128xf32> to vector<256x128xbf16>
    %c8 = arith.constant 8 : index
    %c0_57 = arith.constant 0 : index
    %c0_58 = arith.constant 0 : index
    %93 = vector.load %arg2[%c8, %c0_57, %c0_58] : memref<9x128x128xbf16, #tpu.memory_space<vmem>>, vector<1x128x128xbf16>
    %94 = vector.shape_cast %93 : vector<1x128x128xbf16> to vector<128x128xbf16>
    %cst_59 = arith.constant dense<0.000000e+00> : vector<256x128xf32>
    %95 = tpu.matmul %92, %94, %cst_59 {dimension_numbers = #tpu.dot_dimension_numbers<[1], [0], [0], [1], [0, 0, 1, 1], [], []>} : vector<256x128xbf16>, vector<128x128xbf16>, vector<256x128xf32> -> vector<256x128xf32>
    %c8_60 = arith.constant 8 : index
    %c0_61 = arith.constant 0 : index
    %c0_62 = arith.constant 0 : index
    %96 = vector.load %arg3[%c8_60, %c0_61, %c0_62] : memref<9x1x128xf32, #tpu.memory_space<vmem>>, vector<1x1x128xf32>
    %97 = vector.shape_cast %96 : vector<1x1x128xf32> to vector<1x128xf32>
    %98 = vector.broadcast %97 : vector<1x128xf32> to vector<256x128xf32>
    %99 = arith.addf %95, %98 : vector<256x128xf32>
    %c0_63 = arith.constant 0 : index
    %c0_64 = arith.constant 0 : index
    %100 = vector.load %arg4[%c0_63, %c0_64] : memref<256x128xf32, #tpu.memory_space<vmem>>, vector<256x128xf32>
    tpu.vector_store %arg4[%c0_63, %c0_64], %99 {strides = array<i32>} : memref<256x128xf32, #tpu.memory_space<vmem>>, vector<256x128xf32>,
    return
  }
  func.func @transform_0(%arg0: i32) -> (i32, i32) {
    %c0_i32 = arith.constant 0 : i32
    %c0_i32_0 = arith.constant 0 : i32
    return %arg0, %c0_i32 : i32, i32
  }
  func.func @transform_1(%arg0: i32) -> (i32, i32, i32) {
    %c0_i32 = arith.constant 0 : i32
    %c0_i32_0 = arith.constant 0 : i32
    %c0_i32_1 = arith.constant 0 : i32
    %c0_i32_2 = arith.constant 0 : i32
    return %c0_i32, %c0_i32_0, %c0_i32_1 : i32, i32, i32
  }
  func.func @transform_2(%arg0: i32) -> (i32, i32, i32) {
    %c0_i32 = arith.constant 0 : i32
    %c0_i32_0 = arith.constant 0 : i32
    %c0_i32_1 = arith.constant 0 : i32
    %c0_i32_2 = arith.constant 0 : i32
    return %c0_i32, %c0_i32_0, %c0_i32_1 : i32, i32, i32
  }
  func.func @transform_3(%arg0: i32) -> (i32, i32) {
    %c0_i32 = arith.constant 0 : i32
    %c0_i32_0 = arith.constant 0 : i32
    return %arg0, %c0_i32 : i32, i32
  }
}

</mosaic_0001>

<bundles_post_ra>
// kernel: mlp_resblock_forward.1
= control target key start
LH: loop header
LB: loop body
LE: loop exit
PB: predicated region body
PF: predicated region fallthrough
CT: control target
= control target key end

     0   :  { %8 = vsyncpa [#allocation3], 0  ;;  %s4163_s0 = inlined_call_operand.hbm [shape: f32[512,128], index: 0, kind: input, shape index: {}]   ;;  %s4164_s1 = inlined_call_operand.hbm [shape: bf16[9,128,128], index: 1, kind: input, shape index: {}]   ;;  %s4165_s2 = inlined_call_operand.hbm [shape: f32[9,1,128], index: 2, kind: input, shape index: {}]   ;;  %s4166_s3 = inlined_call_operand.hbm [shape: f32[512,128], index: 3, kind: output, shape index: {}]  }
   0x1   :  { %10 = vsyncpa [#allocation3 + $0x1], 0 }
   0x2   :  { %11 = vsyncpa [#allocation6], 0 }
   0x3   :  { %12 = vsyncpa [#allocation4], 0 }
   0x4   :  { %14 = vsyncpa [#allocation4 + $0x1], 0  ;;  %s3259_s12 = smov 0   ;;  %s3261_s13 = smov 0  }
   0x5   :  { %s3263_s14 = smov 0   ;;  %s3265_s15 = smov 0  }
   0x6 LB: > { %s3280_s16 = sadd.s32 4294967295, %s3227_s15   ;;  %s2579_s17 = sadd.s32 4294967294, %s3227_s15   ;;  %s3227_s15 = sphi %s3265_s15, %s4176_s15   ;;  %s3223_s14 = sphi %s3263_s14, %s4175_s14   ;;  %s3219_s13 = sphi %s3261_s13, %s4174_s13   ;;  %s3215_s12 = sphi %s3259_s12, %s4173_s12  }
   0x7   : > { %p40_p0 = scmp.ne.s32.totalorder %s3219_s13, %s3215_s12  ;;  %p41_p1 = scmp.eq.s32.totalorder %s3280_s16, 0 }
   0x8   : > { %p106_p2 = scmp.eq.s32.totalorder %s3280_s16, 1  ;;  %p112_p3 = scmp.eq.s32.totalorder %s2579_s17, 1 }
   0x9   : > { %p3289_p4 = por %p41_p1, %p40_p0  ;;  %p2580_p5 = scmp.ge.s32.totalorder %s3227_s15, 1 }
   0xa   : > { %p3294_p6 = por %p112_p3, %p40_p0  ;;  %p119_p7 = scmp.lt.s32.totalorder %s3227_s15, 3 }
   0xb   : > { %s130_s22 = sshll.u32 %s4164_s1, 4  ;;  %s3229_s24 = smov [#allocation5]   ;;  %s131_s22 = int_to_ptr.hbm [resolvable:$true] %s130_s22 }
   0xc   : > { %p3302_p8 = pnand %p2580_p5, %p119_p7  ;;  %s132_s25 = sshll.u32 %s3229_s24, 4  ;;  %s133_s25 = int_to_ptr.vmem [resolvable:$true] %s132_s25 }
   0xd   : > { %s144_s28 = sshll.u32 %s4165_s2, 4  ;;  %s3230_s29 = smov 64   ;;  %s145_s28 = int_to_ptr.hbm [resolvable:$true] %s144_s28 }
   0xe   : > { %p2995_p9 = pneg %p3302_p8  ;;  %s3231_s30 = smov 4  }
   0xf   : > { %s3232_s4 = smov [#allocation7]   ;;  %s3233_s6 = smov 16  }
  0x10   : > { %p2996_p10 = pnand %p2995_p9, %p41_p1  ;;  %s146_s5 = sshll.u32 %s3232_s4, 4  ;;  %s147_s5 = int_to_ptr.vmem [resolvable:$true] %s146_s5 }
  0x11   : > { %s3234_s7 = smov 1   ;;  %s3315_s8 = sadd.s32 1, %s3227_s15  }
  0x12   : > { %2998 = dma.hbm_to_vmem [thread:$0]  (!%p2996_p10), %s131_s22, 9216, %s133_s25, [#allocation6], %s3230_s29, %s3230_s29, %s3231_s30  }
  0x13   : > { %3001 = dma.hbm_to_vmem [thread:$0]  (!%p2996_p10), %s145_s28, 144, %s147_s5, [#allocation6], %s3233_s6, %s3233_s6, %s3234_s7  }
  0x14   : > { %s24_s9 = ssub.s32 %s3227_s15, %s3315_s8  ;;  %s27_s10 = sadd.s32 1, %s3223_s14 }
  0x15   : > { %p25_p12 = scmp.eq.s32.totalorder %s24_s9, 0  ;;  %p34_p13 = scmp.ne.s32.totalorder %s3223_s14, %s3219_s13 }
  0x16   : > { %p35_p0 = scmp.eq.s32.totalorder %s3227_s15, 0  ;;  %p3012_p7 = scmp.lt.s32.totalorder %s3227_s15, 2 }
  0x17   : > { %s3324_s11 = scalar_select %p25_p12, %s3223_s14, %s27_s10  }
  0x18   : > { %p36_p3 = por %p35_p0, %p34_p13  ;;  %p3328_p5 = por %p106_p2, %p34_p13 }
  0x19   : > { %s160_s20 = sand.u32 1, %s3223_s14   ;;  %s2885_s22 = sshll.u32 %s3227_s15, 8 }
  0x1a   : > { %s2584_s21 = sshll.u32 %s160_s20, 8  ;;  %s169_s26 = scalar_lea.hbm %s4163_s0, %s2885_s22 }
  0x1b   : > { %s164_s27 = scalar_lea.vmem [#allocation2], %s2584_s21  ;;  %s170_s29 = sshll.u32 %s169_s26, 4  ;;  %s171_s29 = int_to_ptr.hbm [resolvable:$true] %s170_s29 }
  0x1c   : > { %s172_s28 = sshll.u32 %s164_s27, 4  ;;  %p3338_p9 = pnand %p3012_p7, %p36_p3  ;;  %s173_s28 = int_to_ptr.vmem [resolvable:$true] %s172_s28 }
  0x1d   : > { %s161_s4 = scalar_lea.sflag [#allocation3], %s160_s20  ;;  %s3127_s5 = sshra.s32 %s171_s29, 4  ;;  %s3128_s5 = int_to_ptr.hbm [resolvable:$true] %s3127_s5 }
  0x1e   : > { %s3129_s6 = scalar_lea.hbm %s3128_s5, 256  ;;  %p3131_p10 = pneg %p3338_p9 }
  0x1f   : > { %p3130_p2 = scmp.ne.s32.totalorder %s3128_s5, %s3129_s6  ;;  %s3134_s10 = scalar_lea.hbm %s4163_s0, 512 }
  0x20   : > { %p3135_p0 = scmp.lt.s32.totalorder %s3128_s5, %s4163_s0  ;;  %p3136_p3 = scmp.lt.s32.totalorder %s3134_s10, %s3129_s6 }
  0x21   : > { %p3132_p12 = pnand %p3131_p10, %p3130_p2 }
  0x22   : > { %p3137_p7 = por %p3136_p3, %p3135_p0 }
  0x23   : > { %p3133_p13 = pneg %p3132_p12 }
  0x25   : > { %p3138_p11 = pnand %p3137_p7, %p3133_p13 }
  0x27   : > { %3141 = shalt.err (!%p3138_p11)
}
  0x28   : > { %s3235_s20 = smov 128   ;;  %s3236_s24 = smov 8  }
  0x29   : > { %3005 = dma.hbm_to_vmem [thread:$0]  (!%p3338_p9), %s171_s29, 4096, %s173_s28, %s161_s4, %s3235_s20, %s3235_s20, %s3236_s24  }
  0x2a   : > { %184 = sbr.rel (%p3302_p8) target bundleno = 1628 (0x65c), region = 32  ;;  %s3355_s25 = sand.u32 (!%p3302_p8), 1, %s3219_s13  }
  0x2b   : > { %s2588_s26 = sshll.u32 (!%p3302_p8), %s3355_s25, 8  ;;  %s187_s27 = scalar_lea.sflag (!%p3302_p8), [#allocation3], %s3355_s25 }
  0x2c   : > { %s3361_s5 = scalar_lea.vmem (!%p3302_p8), [#allocation2], %s2588_s26 }
  0x2f   : > { %3202 = dma.done.wait (%p3289_p4), %s187_s27, 4096  }
  0x30   : > { %3204 = vsyncadd (%p3289_p4), %s187_s27, 4294963200 }
  0x31   : > { %3206 = dma.done.wait (%p41_p1), [#allocation6], 9360  }
  0x32   : > { %3208 = vsyncadd (%p41_p1), [#allocation6], 4294957936  ;;  %v2893_v0 = vld [vmem:[#allocation5 + $0x38] sm:$0xff]  ;;  %v2892_v1 = vld [vmem:[#allocation5 + $0x30] sm:$0xff]  ;;  %s4050_s18 = scalar_lea.vmem [#allocation8], %s2588_s26  ;;  %s2958_s23 = sshll.u32 %s3280_s16, 8 }
  0x33   : > { %342 = vmatpush.bf16.msra.mxu0 %v2893_v0  ;;  %2959 = vmatpush.bf16.msra.mxu1 %v2893_v0  ;;  %v2891_v2 = vld [vmem:[#allocation5 + $0x28] sm:$0xff]  ;;  %v2890_v3 = vld [vmem:[#allocation5 + $0x20] sm:$0xff]  ;;  %v2889_v4 = vld [vmem:[#allocation5 + $0x18] sm:$0xff]  ;;  %s2483_s30 = scalar_lea.hbm %s4166_s3, %s2958_s23  ;;  %s2484_s4 = sshll.u32 %s4050_s18, 4  ;;  %s2485_s4 = int_to_ptr.vmem [resolvable:$true] %s2484_s4 }
  0x34   : > { %2960 = vmatpush.bf16.msra.mxu2 %v2893_v0  ;;  %2961 = vmatpush.bf16.msra.mxu3 %v2893_v0  ;;  %v2888_v5 = vld [vmem:[#allocation5 + $0x10] sm:$0xff]  ;;  %v2887_v6 = vld [vmem:[#allocation5 + $0x8] sm:$0xff]  ;;  %v2886_v7 = vld [vmem:[#allocation5] sm:$0xff]  ;;  %s2486_s6 = sshll.u32 %s2483_s30, 4  ;;  %s2472_s7 = scalar_lea.sflag [#allocation4], %s3355_s25  ;;  %s2487_s6 = int_to_ptr.hbm [resolvable:$true] %s2486_s6 }
  0x35   : > { %v226_v8 = vld [vmem:[%s3361_s5] sm:$0xff]  ;;  %v227_v9 = vld [vmem:[%s3361_s5 + $0x8] sm:$0xff]  ;;  %v228_v11 = vld [vmem:[%s3361_s5 + $0x10] sm:$0xff]  ;;  %s3171_s9 = sshra.s32 %s2487_s6, 4  ;;  %s3177_s22 = scalar_lea.hbm %s4166_s3, 512  ;;  %s3172_s9 = int_to_ptr.hbm [resolvable:$true] %s3171_s9 }
  0x36   : > { %v258_v10 = vpack.c.bf16 %v227_v9, %v226_v8  ;;  %v229_v12 = vld [vmem:[%s3361_s5 + $0x18] sm:$0xff]  ;;  %v234_v14 = vld [vmem:[%s3361_s5 + $0x40] sm:$0xff]  ;;  %v235_v15 = vld [vmem:[%s3361_s5 + $0x48] sm:$0xff]  ;;  %s3173_s16 = scalar_lea.hbm %s3172_s9, 256  ;;  %p3178_p11 = scmp.lt.s32.totalorder %s3172_s9, %s4166_s3 }
  0x37   : > { %343 = vmatpush.bf16.msra.mxu0 %v2892_v1  ;;  %2962 = vmatpush.bf16.msra.mxu1 %v2892_v1  ;;  %v259_v13 = vpack.c.bf16 %v229_v12, %v228_v11  ;;  %v262_v16 = vpack.c.bf16 %v235_v15, %v234_v14  ;;  %v2901_v17 = vld [vmem:[#allocation5 + $0x78] sm:$0xff]  ;;  %v2900_v18 = vld [vmem:[#allocation5 + $0x70] sm:$0xff]  ;;  %v2899_v19 = vld [vmem:[#allocation5 + $0x68] sm:$0xff]  ;;  %p3174_p1 = scmp.ne.s32.totalorder %s3172_s9, %s3173_s16  ;;  %p3179_p9 = scmp.lt.s32.totalorder %s3177_s22, %s3173_s16 }
  0x38   : > { %2963 = vmatpush.bf16.msra.mxu2 %v2892_v1  ;;  %2964 = vmatpush.bf16.msra.mxu3 %v2892_v1  ;;  %v230_v20 = vld [vmem:[%s3361_s5 + $0x20] sm:$0xff]  ;;  %v231_v21 = vld [vmem:[%s3361_s5 + $0x28] sm:$0xff]  ;;  %v236_v23 = vld [vmem:[%s3361_s5 + $0x50] sm:$0xff] }
  0x39   : > { %v260_v22 = vpack.c.bf16 %v231_v21, %v230_v20  ;;  %v237_v24 = vld [vmem:[%s3361_s5 + $0x58] sm:$0xff]  ;;  %v2898_v26 = vld [vmem:[#allocation5 + $0x60] sm:$0xff]  ;;  %v243_v28 = vld [vmem:[%s3361_s5 + $0x88] sm:$0xff]  ;;  %p3175_p4 = pnand %p3174_p1, %p3328_p5  ;;  %p3180_p2 = por %p3179_p9, %p3178_p11 }
  0x3a   : > { %v263_v25 = vpack.c.bf16 %v237_v24, %v236_v23  ;;  %v242_v27 = vld [vmem:[%s3361_s5 + $0x80] sm:$0xff]  ;;  %v2897_v29 = vld [vmem:[#allocation5 + $0x58] sm:$0xff]  ;;  %v232_v31 = vld [vmem:[%s3361_s5 + $0x30] sm:$0xff] }
  0x3b   : > { %344 = vmatpush.bf16.msra.mxu0 %v2891_v2  ;;  %2965 = vmatpush.bf16.msra.mxu1 %v2891_v2  ;;  %v266_v30 = vpack.c.bf16 %v243_v28, %v242_v27  ;;  %v233_v32 = vld [vmem:[%s3361_s5 + $0x38] sm:$0xff]  ;;  %v2896_v33 = vld [vmem:[#allocation5 + $0x50] sm:$0xff]  ;;  %v238_v35 = vld [vmem:[%s3361_s5 + $0x60] sm:$0xff]  ;;  %p3176_p8 = pneg %p3175_p4 }
  0x3c   : > { %2966 = vmatpush.bf16.msra.mxu2 %v2891_v2  ;;  %2967 = vmatpush.bf16.msra.mxu3 %v2891_v2  ;;  %v261_v34 = vpack.c.bf16 %v233_v32, %v232_v31  ;;  %v239_v36 = vld [vmem:[%s3361_s5 + $0x68] sm:$0xff]  ;;  %v240_v38 = vld [vmem:[%s3361_s5 + $0x70] sm:$0xff]  ;;  %v241_v39 = vld [vmem:[%s3361_s5 + $0x78] sm:$0xff] }
  0x3d   : > { %v264_v37 = vpack.c.bf16 %v239_v36, %v238_v35  ;;  %v265_v40 = vpack.c.bf16 %v241_v39, %v240_v38  ;;  %v244_v41 = vld [vmem:[%s3361_s5 + $0x90] sm:$0xff]  ;;  %v245_v42 = vld [vmem:[%s3361_s5 + $0x98] sm:$0xff]  ;;  %v2895_v44 = vld [vmem:[#allocation5 + $0x48] sm:$0xff]  ;;  %p3181_p10 = pnand %p3180_p2, %p3176_p8 }
  0x3e   : > { %v267_v43 = vpack.c.bf16 %v245_v42, %v244_v41  ;;  %v2894_v45 = vld [vmem:[#allocation5 + $0x40] sm:$0xff]  ;;  %v247_v47 = vld [vmem:[%s3361_s5 + $0xa8] sm:$0xff]  ;;  %v248_v50 = vld [vmem:[%s3361_s5 + $0xb0] sm:$0xff] }
  0x3f   : > { %345 = vmatpush.bf16.msra.mxu0 %v2890_v3  ;;  %2968 = vmatpush.bf16.msra.mxu1 %v2890_v3  ;;  %v246_v46 = vld [vmem:[%s3361_s5 + $0xa0] sm:$0xff]  ;;  %v249_v51 = vld [vmem:[%s3361_s5 + $0xb8] sm:$0xff]  ;;  %v251_v0 = vld [vmem:[%s3361_s5 + $0xc8] sm:$0xff] }
  0x40   : > { %2969 = vmatpush.bf16.msra.mxu2 %v2890_v3  ;;  %2970 = vmatpush.bf16.msra.mxu3 %v2890_v3  ;;  %v268_v48 = vpack.c.bf16 %v247_v47, %v246_v46  ;;  %v3395_v52 = vld [vmem:[#allocation7] ss:$0 sm:$0xff]  ;;  %v269_v53 = vpack.c.bf16 %v249_v51, %v248_v50  ;;  %v252_v11 = vld [vmem:[%s3361_s5 + $0xd0] sm:$0xff]  ;;  %v253_v12 = vld [vmem:[%s3361_s5 + $0xd8] sm:$0xff] }
  0x41   : > { %v250_v63 = vld [vmem:[%s3361_s5 + $0xc0] sm:$0xff]  ;;  %v2909_v27 = vld [vmem:[#allocation5 + $0xb8] sm:$0xff]  ;;  %v256_v38 = vld [vmem:[%s3361_s5 + $0xf0] sm:$0xff] }
  0x42   : > { %v270_v1 = vpack.c.bf16 %v251_v0, %v250_v63  ;;  %v254_v24 = vld [vmem:[%s3361_s5 + $0xe0] sm:$0xff]  ;;  %v257_v39 = vld [vmem:[%s3361_s5 + $0xf8] sm:$0xff]  ;;  %v2908_v41 = vld [vmem:[#allocation5 + $0xb0] sm:$0xff] }
  0x43   : > { %346 = vmatpush.bf16.msra.mxu0 %v2889_v4  ;;  %2971 = vmatpush.bf16.msra.mxu1 %v2889_v4  ;;  %v2906_v51 = vld [vmem:[#allocation5 + $0xa0] sm:$0xff] }
  0x44   : > { %2972 = vmatpush.bf16.msra.mxu2 %v2889_v4  ;;  %2973 = vmatpush.bf16.msra.mxu3 %v2889_v4 }
  0x47   : > { %347 = vmatpush.bf16.msra.mxu0 %v2888_v5  ;;  %2974 = vmatpush.bf16.msra.mxu1 %v2888_v5 }
  0x48   : > { %2975 = vmatpush.bf16.msra.mxu2 %v2888_v5  ;;  %2976 = vmatpush.bf16.msra.mxu3 %v2888_v5 }
  0x4b   : > { %348 = vmatpush.bf16.msra.mxu0 %v2887_v6  ;;  %2977 = vmatpush.bf16.msra.mxu1 %v2887_v6 }
  0x4c   : > { %2978 = vmatpush.bf16.msra.mxu2 %v2887_v6  ;;  %2979 = vmatpush.bf16.msra.mxu3 %v2887_v6 }
  0x4f   : > { %349 = vmatpush.bf16.msra.mxu0 %v2886_v7  ;;  %2980 = vmatpush.bf16.msra.mxu1 %v2886_v7 }
  0x50   : > { %2981 = vmatpush.bf16.msra.mxu2 %v2886_v7  ;;  %2982 = vmatpush.bf16.msra.mxu3 %v2886_v7 }
  0x52   : > { %350 = vmatmul.bf16.vlgmr.msra.gmra.mxu0 %v258_v10  ;;  %370 = vmatmul.bf16.vlgmr.msra.gmra.mxu1 %v262_v16 }
  0x53   : > { %581 = vmatpush.bf16.msrb.mxu1 %v2901_v17  ;;  %390 = vmatmul.bf16.vlgmr.msra.gmra.mxu2 %v266_v30 }
  0x54   : > { %410 = vmatmul.bf16.vlgmr.msra.gmra.mxu3 %v270_v1  ;;  %820 = vmatpush.bf16.msrb.mxu2 %v2909_v27  ;;  %v2904_v1 = vld [vmem:[#allocation5 + $0x90] sm:$0xff] }
  0x57   : > { %582 = vmatpush.bf16.msrb.mxu1 %v2900_v18 }
  0x58   : > { %821 = vmatpush.bf16.msrb.mxu2 %v2908_v41 }
  0x5b   : > { %583 = vmatpush.bf16.msrb.mxu1 %v2899_v19 }
  0x5f   : > { %584 = vmatpush.bf16.msrb.mxu1 %v2898_v26 }
  0x62   : > { %355 = vmatmul.bf16.gmra.mxu0 %v259_v13  ;;  %375 = vmatmul.bf16.gmra.mxu1 %v263_v25  ;;  %v271_v13 = vpack.c.bf16 %v253_v12, %v252_v11  ;;  %v255_v25 = vld [vmem:[%s3361_s5 + $0xe8] sm:$0xff] }
  0x63   : > { %585 = vmatpush.bf16.msrb.mxu1 %v2897_v29  ;;  %395 = vmatmul.bf16.gmra.mxu2 %v267_v43  ;;  %v272_v26 = vpack.c.bf16 %v255_v25, %v254_v24 }
  0x64   : > { %415 = vmatmul.bf16.gmra.mxu3 %v271_v13 }
  0x67   : > { %586 = vmatpush.bf16.msrb.mxu1 %v2896_v33 }
  0x6b   : > { %587 = vmatpush.bf16.msrb.mxu1 %v2895_v44  ;;  %v2907_v44 = vld [vmem:[#allocation5 + $0xa8] sm:$0xff] }
  0x6c   : > { %822 = vmatpush.bf16.msrb.mxu2 %v2907_v44 }
  0x6f   : > { %588 = vmatpush.bf16.msrb.mxu1 %v2894_v45 }
  0x70   : > { %823 = vmatpush.bf16.msrb.mxu2 %v2906_v51 }
  0x72   : > { %360 = vmatmul.bf16.gmra.mxu0 %v260_v22  ;;  %380 = vmatmul.bf16.gmra.mxu1 %v264_v37 }
  0x73   : > { %400 = vmatmul.bf16.gmra.mxu2 %v268_v48 }
  0x74   : > { %420 = vmatmul.bf16.gmra.mxu3 %v272_v26 }
  0x82   : > { %365 = vmatmul.bf16.gmra.mxu0 %v261_v34  ;;  %385 = vmatmul.bf16.gmra.mxu1 %v265_v40  ;;  %v273_v40 = vpack.c.bf16 %v257_v39, %v256_v38 }
  0x83   : > { %405 = vmatmul.bf16.gmra.mxu2 %v269_v53 }
  0x84   : > { %425 = vmatmul.bf16.gmra.mxu3 %v273_v40 }
  0xcf   : > { %v351_v49 = vpop.f32.mrf.mxu0  ;;  %v371_v18 = vpop.f32.mrf.mxu1 }
  0xd0   : > { %v352_v54 = vadd.f32 %v3395_v52, %v351_v49  ;;  %v372_v42 = vadd.f32 %v3395_v52, %v371_v18 }
  0xd2   : > { %v431_v56 = vmul.f32 0.1, %v352_v54  ;;  %v439_v45 = vmul.f32 0.1, %v372_v42 }
  0xd4   : > { %v3399_v59 = vmax.f32 %v352_v54, %v431_v56  ;;  %v3439_v48 = vmax.f32 %v372_v42, %v439_v45  ;;  %v2905_v56 = vld [vmem:[#allocation5 + $0x98] sm:$0xff] }
  0xd5   : > { %824 = vmatpush.bf16.msrb.mxu2 %v2905_v56 }
  0xd7   : > { %v353_v55 = vpop.f32.mrf.mxu0  ;;  %v373_v28 = vpop.f32.mrf.mxu1 }
  0xd8   : > { %v354_v57 = vadd.f32 %v3395_v52, %v353_v55  ;;  %v374_v43 = vadd.f32 %v3395_v52, %v373_v28 }
  0xd9   : > { %825 = vmatpush.bf16.msrb.mxu2 %v2904_v1 }
  0xda   : > { %v432_v58 = vmul.f32 0.1, %v354_v57  ;;  %v440_v46 = vmul.f32 0.1, %v374_v43 }
  0xdc   : > { %v3401_v60 = vmax.f32 %v354_v57, %v432_v58  ;;  %v3441_v49 = vmax.f32 %v374_v43, %v440_v46 }
  0xde   : > { %v495_v61 = vpack.c.bf16 %v3401_v60, %v3399_v59  ;;  %v499_v50 = vpack.c.bf16 %v3441_v49, %v3439_v48 }
  0xdf   : > { %v356_v62 = vpop.f32.mrf.mxu0  ;;  %v376_v36 = vpop.f32.mrf.mxu1 }
  0xe0   : > { %589 = vmatmul.bf16.vlgmr.msrb.gmra.mxu1 %v495_v61  ;;  %v357_v2 = vadd.f32 %v3395_v52, %v356_v62  ;;  %v377_v54 = vadd.f32 %v3395_v52, %v376_v36 }
  0xe2   : > { %v433_v4 = vmul.f32 0.1, %v357_v2  ;;  %v441_v57 = vmul.f32 0.1, %v377_v54 }
  0xe4   : > { %v3409_v7 = vmax.f32 %v357_v2, %v433_v4  ;;  %v3447_v61 = vmax.f32 %v377_v54, %v441_v57 }
  0xe7   : > { %v358_v3 = vpop.f32.mrf.mxu0  ;;  %v378_v47 = vpop.f32.mrf.mxu1 }
  0xe8   : > { %v359_v5 = vadd.f32 %v3395_v52, %v358_v3  ;;  %v379_v55 = vadd.f32 %v3395_v52, %v378_v47 }
  0xea   : > { %v434_v6 = vmul.f32 0.1, %v359_v5  ;;  %v442_v58 = vmul.f32 0.1, %v379_v55 }
  0xec   : > { %v3411_v8 = vmax.f32 %v359_v5, %v434_v6  ;;  %v3449_v62 = vmax.f32 %v379_v55, %v442_v58 }
  0xee   : > { %v496_v9 = vpack.c.bf16 %v3411_v8, %v3409_v7  ;;  %v500_v0 = vpack.c.bf16 %v3449_v62, %v3447_v61 }
  0xef   : > { %v361_v10 = vpop.f32.mrf.mxu0  ;;  %v381_v53 = vpop.f32.mrf.mxu1 }
  0xf0   : > { %594 = vmatmul.bf16.gmra.mxu1 %v496_v9  ;;  %v362_v14 = vadd.f32 %v3395_v52, %v361_v10  ;;  %v382_v2 = vadd.f32 %v3395_v52, %v381_v53  ;;  %v391_v9 = vpop.f32.mrf.mxu2 }
  0xf1   : > { %v392_v27 = vadd.f32 %v3395_v52, %v391_v9 }
  0xf2   : > { %v435_v16 = vmul.f32 0.1, %v362_v14  ;;  %v443_v5 = vmul.f32 0.1, %v382_v2 }
  0xf4   : > { %v3419_v20 = vmax.f32 %v362_v14, %v435_v16  ;;  %v3455_v10 = vmax.f32 %v382_v2, %v443_v5  ;;  %v2903_v16 = vld [vmem:[#allocation5 + $0x88] sm:$0xff] }
  0xf5   : > { %826 = vmatpush.bf16.msrb.mxu2 %v2903_v16 }
  0xf7   : > { %v363_v15 = vpop.f32.mrf.mxu0  ;;  %v383_v63 = vpop.f32.mrf.mxu1 }
  0xf8   : > { %v364_v17 = vadd.f32 %v3395_v52, %v363_v15  ;;  %v384_v3 = vadd.f32 %v3395_v52, %v383_v63 }
  0xfa   : > { %v436_v19 = vmul.f32 0.1, %v364_v17  ;;  %v444_v6 = vmul.f32 0.1, %v384_v3 }
  0xfc   : > { %v3421_v21 = vmax.f32 %v364_v17, %v436_v19  ;;  %v3457_v11 = vmax.f32 %v384_v3, %v444_v6  ;;  %v393_v17 = vpop.f32.mrf.mxu2 }
  0xfd   : > { %v394_v28 = vadd.f32 %v3395_v52, %v393_v17 }
  0xfe   : > { %v497_v22 = vpack.c.bf16 %v3421_v21, %v3419_v20  ;;  %v501_v12 = vpack.c.bf16 %v3457_v11, %v3455_v10 }
  0xff   : > { %v366_v23 = vpop.f32.mrf.mxu0  ;;  %v386_v4 = vpop.f32.mrf.mxu1 }
 0x100   : > { %599 = vmatmul.bf16.gmra.mxu1 %v497_v22  ;;  %v367_v29 = vadd.f32 %v3395_v52, %v366_v23  ;;  %v387_v14 = vadd.f32 %v3395_v52, %v386_v4  ;;  %v2902_v22 = vld [vmem:[#allocation5 + $0x80] sm:$0xff] }
 0x101   : > { %827 = vmatpush.bf16.msrb.mxu2 %v2902_v22 }
 0x102   : > { %v437_v31 = vmul.f32 0.1, %v367_v29  ;;  %v445_v18 = vmul.f32 0.1, %v387_v14 }
 0x104   : > { %v3429_v34 = vmax.f32 %v367_v29, %v437_v31  ;;  %v3463_v23 = vmax.f32 %v387_v14, %v445_v18  ;;  %v396_v25 = vpop.f32.mrf.mxu2  ;;  %v447_v29 = vmul.f32 0.1, %v392_v27  ;;  %v411_v14 = vpop.f32.mrf.mxu3 }
 0x105   : > { %v397_v40 = vadd.f32 %v3395_v52, %v396_v25 }
 0x107   : > { %v368_v30 = vpop.f32.mrf.mxu0  ;;  %v388_v13 = vpop.f32.mrf.mxu1  ;;  %v449_v44 = vmul.f32 0.1, %v397_v40 }
 0x108   : > { %v369_v32 = vadd.f32 %v3395_v52, %v368_v30  ;;  %v389_v15 = vadd.f32 %v3395_v52, %v388_v13  ;;  %v448_v30 = vmul.f32 0.1, %v394_v28 }
 0x109   : > { %v3483_v51 = vmax.f32 %v397_v40, %v449_v44 }
 0x10a   : > { %v438_v33 = vmul.f32 0.1, %v369_v32  ;;  %v446_v19 = vmul.f32 0.1, %v389_v15 }
 0x10c   : > { %v3431_v35 = vmax.f32 %v369_v32, %v438_v33  ;;  %v3465_v24 = vmax.f32 %v389_v15, %v446_v19  ;;  %v398_v31 = vpop.f32.mrf.mxu2  ;;  %v3471_v32 = vmax.f32 %v392_v27, %v447_v29  ;;  %v3473_v33 = vmax.f32 %v394_v28, %v448_v30  ;;  %v413_v30 = vpop.f32.mrf.mxu3 }
 0x10d   : > { %v399_v41 = vadd.f32 %v3395_v52, %v398_v31 }
 0x10e   : > { %v498_v37 = vpack.c.bf16 %v3431_v35, %v3429_v34  ;;  %v502_v26 = vpack.c.bf16 %v3465_v24, %v3463_v23  ;;  %v503_v38 = vpack.c.bf16 %v3473_v33, %v3471_v32 }
 0x10f   : > { %v450_v45 = vmul.f32 0.1, %v399_v41 }
 0x110   : > { %604 = vmatmul.bf16.gmra.mxu1 %v498_v37  ;;  %v3475_v37 = vld [vmem:[#allocation7 + $0x1] ss:$0 sm:$0xff] }
 0x111   : > { %v3485_v53 = vmax.f32 %v399_v41, %v450_v45 }
 0x113   : > { %v504_v63 = vpack.c.bf16 %v3485_v53, %v3483_v51 }
 0x114   : > { %v401_v39 = vpop.f32.mrf.mxu2 }
 0x11c   : > { %v403_v56 = vpop.f32.mrf.mxu2 }
 0x11d   : > { %v404_v1 = vadd.f32 %v3395_v52, %v403_v56  ;;  %v414_v56 = vadd.f32 %v3395_v52, %v413_v30 }
 0x11f   : > { %v452_v6 = vmul.f32 0.1, %v404_v1 }
 0x120   : > { %609 = vmatmul.bf16.gmra.mxu1 %v499_v50 }
 0x121   : > { %v3495_v16 = vmax.f32 %v404_v1, %v452_v6 }
 0x124   : > { %v406_v3 = vpop.f32.mrf.mxu2 }
 0x125   : > { %v407_v27 = vadd.f32 %v3395_v52, %v406_v3 }
 0x130   : > { %614 = vmatmul.bf16.gmra.mxu1 %v500_v0  ;;  %v402_v0 = vadd.f32 %v3395_v52, %v401_v39 }
 0x132   : > { %v451_v5 = vmul.f32 0.1, %v402_v0 }
 0x134   : > { %v3493_v15 = vmax.f32 %v402_v0, %v451_v5  ;;  %v456_v0 = vmul.f32 0.1, %v414_v56 }
 0x136   : > { %v505_v25 = vpack.c.bf16 %v3495_v16, %v3493_v15  ;;  %v3515_v6 = vmax.f32 %v414_v56, %v456_v0 }
 0x140   : > { %619 = vmatmul.bf16.gmra.mxu1 %v501_v12 }
 0x150   : > { %624 = vmatmul.bf16.gmra.mxu1 %v502_v26  ;;  %v408_v26 = vpop.f32.mrf.mxu2 }
 0x151   : > { %v409_v28 = vadd.f32 %v3395_v52, %v408_v26  ;;  %v2917_v26 = vld [vmem:[#allocation5 + $0xf8] sm:$0xff] }
 0x152   : > { %1091 = vmatpush.bf16.msrb.mxu3 %v2917_v26 }
 0x15d   : > { %v590_v36 = vpop.f32.mrf.mxu1 }
 0x15e   : > { %v591_v42 = vadd.f32 %v3475_v37, %v590_v36  ;;  %v453_v36 = vmul.f32 0.1, %v407_v27 }
 0x160   : > { %629 = vmatmul.bf16.gmra.mxu1 %v503_v38  ;;  %v670_v46 = vmul.f32 0.1, %v591_v42  ;;  %v454_v38 = vmul.f32 0.1, %v409_v28 }
 0x162   : > { %v702_v54 = vmax.f32 %v591_v42, %v670_v46  ;;  %v3503_v42 = vmax.f32 %v407_v27, %v453_v36 }
 0x165   : > { %v592_v43 = vpop.f32.mrf.mxu1 }
 0x166   : > { %v593_v47 = vadd.f32 %v3475_v37, %v592_v43  ;;  %v3505_v43 = vmax.f32 %v409_v28, %v454_v38  ;;  %v2916_v38 = vld [vmem:[#allocation5 + $0xf0] sm:$0xff] }
 0x167   : > { %1092 = vmatpush.bf16.msrb.mxu3 %v2916_v38 }
 0x168   : > { %v671_v50 = vmul.f32 0.1, %v593_v47 }
 0x16a   : > { %v703_v55 = vmax.f32 %v593_v47, %v671_v50  ;;  %v416_v50 = vpop.f32.mrf.mxu3 }
 0x16c   : > { %v734_v57 = vpack.c.bf16 %v703_v55, %v702_v54  ;;  %v506_v54 = vpack.c.bf16 %v3505_v43, %v3503_v42  ;;  %v412_v55 = vadd.f32 %v3395_v52, %v411_v14 }
 0x16d   : > { %v595_v58 = vpop.f32.mrf.mxu1 }
 0x16e   : > { %828 = vmatmul.bf16.vlgmr.msrb.gmra.mxu2 %v734_v57  ;;  %v596_v2 = vadd.f32 %v3475_v37, %v595_v58 }
 0x170   : > { %634 = vmatmul.bf16.gmra.mxu1 %v504_v63  ;;  %v672_v9 = vmul.f32 0.1, %v596_v2  ;;  %v455_v63 = vmul.f32 0.1, %v412_v55 }
 0x172   : > { %v704_v17 = vmax.f32 %v596_v2, %v672_v9  ;;  %v418_v3 = vpop.f32.mrf.mxu3  ;;  %v3513_v5 = vmax.f32 %v412_v55, %v455_v63 }
 0x175   : > { %v597_v4 = vpop.f32.mrf.mxu1 }
 0x176   : > { %v598_v12 = vadd.f32 %v3475_v37, %v597_v4 }
 0x178   : > { %v673_v13 = vmul.f32 0.1, %v598_v12 }
 0x17a   : > { %v705_v18 = vmax.f32 %v598_v12, %v673_v13 }
 0x17c   : > { %v735_v19 = vpack.c.bf16 %v705_v18, %v704_v17  ;;  %v507_v17 = vpack.c.bf16 %v3515_v6, %v3513_v5  ;;  %v421_v18 = vpop.f32.mrf.mxu3 }
 0x17d   : > { %v600_v22 = vpop.f32.mrf.mxu1 }
 0x17e   : > { %833 = vmatmul.bf16.gmra.mxu2 %v735_v19  ;;  %v601_v29 = vadd.f32 %v3475_v37, %v600_v22  ;;  %v417_v19 = vadd.f32 %v3395_v52, %v416_v50  ;;  %v419_v22 = vadd.f32 %v3395_v52, %v418_v3 }
 0x180   : > { %639 = vmatmul.bf16.gmra.mxu1 %v505_v25  ;;  %v674_v39 = vmul.f32 0.1, %v601_v29  ;;  %v457_v28 = vmul.f32 0.1, %v417_v19 }
 0x182   : > { %v706_v44 = vmax.f32 %v601_v29, %v674_v39  ;;  %v458_v29 = vmul.f32 0.1, %v419_v22  ;;  %v3523_v39 = vmax.f32 %v417_v19, %v457_v28 }
 0x185   : > { %v602_v31 = vpop.f32.mrf.mxu1 }
 0x186   : > { %v603_v40 = vadd.f32 %v3475_v37, %v602_v31 }
 0x188   : > { %v675_v41 = vmul.f32 0.1, %v603_v40 }
 0x18a   : > { %v707_v45 = vmax.f32 %v603_v40, %v675_v41  ;;  %v3525_v40 = vmax.f32 %v419_v22, %v458_v29  ;;  %v2913_v29 = vld [vmem:[#allocation5 + $0xd8] sm:$0xff] }
 0x18c   : > { %v736_v46 = vpack.c.bf16 %v707_v45, %v706_v44  ;;  %v423_v45 = vpop.f32.mrf.mxu3  ;;  %v508_v50 = vpack.c.bf16 %v3525_v40, %v3523_v39 }
 0x18d   : > { %v605_v47 = vpop.f32.mrf.mxu1  ;;  %v424_v55 = vadd.f32 %v3395_v52, %v423_v45 }
 0x18e   : > { %838 = vmatmul.bf16.gmra.mxu2 %v736_v46  ;;  %v606_v57 = vadd.f32 %v3475_v37, %v605_v47 }
 0x190   : > { %644 = vmatmul.bf16.gmra.mxu1 %v506_v54  ;;  %v676_v1 = vmul.f32 0.1, %v606_v57  ;;  %v422_v54 = vadd.f32 %v3395_v52, %v421_v18 }
 0x192   : > { %v708_v9 = vmax.f32 %v606_v57, %v676_v1  ;;  %v2915_v57 = vld [vmem:[#allocation5 + $0xe8] sm:$0xff]  ;;  %v459_v0 = vmul.f32 0.1, %v422_v54  ;;  %v460_v1 = vmul.f32 0.1, %v424_v55 }
 0x193   : > { %1093 = vmatpush.bf16.msrb.mxu3 %v2915_v57 }
 0x195   : > { %v607_v58 = vpop.f32.mrf.mxu1 }
 0x196   : > { %v608_v2 = vadd.f32 %v3475_v37, %v607_v58  ;;  %v426_v58 = vpop.f32.mrf.mxu3 }
 0x197   : > { %v427_v26 = vadd.f32 %v3395_v52, %v426_v58 }
 0x198   : > { %v677_v4 = vmul.f32 0.1, %v608_v2 }
 0x19a   : > { %v709_v12 = vmax.f32 %v608_v2, %v677_v4 }
 0x19c   : > { %v737_v13 = vpack.c.bf16 %v709_v12, %v708_v9  ;;  %v2914_v9 = vld [vmem:[#allocation5 + $0xe0] sm:$0xff]  ;;  %v3533_v12 = vmax.f32 %v422_v54, %v459_v0  ;;  %v2912_v54 = vld [vmem:[#allocation5 + $0xd0] sm:$0xff] }
 0x19d   : > { %v610_v14 = vpop.f32.mrf.mxu1  ;;  %1094 = vmatpush.bf16.msrb.mxu3 %v2914_v9 }
 0x19e   : > { %843 = vmatmul.bf16.gmra.mxu2 %v737_v13  ;;  %v611_v25 = vadd.f32 %v3475_v37, %v610_v14  ;;  %v3535_v13 = vmax.f32 %v424_v55, %v460_v1 }
 0x1a0   : > { %649 = vmatmul.bf16.gmra.mxu1 %v507_v17  ;;  %v678_v30 = vmul.f32 0.1, %v611_v25  ;;  %v509_v22 = vpack.c.bf16 %v3535_v13, %v3533_v12 }
 0x1a1   : > { %1095 = vmatpush.bf16.msrb.mxu3 %v2913_v29 }
 0x1a2   : > { %v710_v41 = vmax.f32 %v611_v25, %v678_v30  ;;  %v428_v25 = vpop.f32.mrf.mxu3 }
 0x1a5   : > { %v612_v27 = vpop.f32.mrf.mxu1  ;;  %1096 = vmatpush.bf16.msrb.mxu3 %v2912_v54 }
 0x1a6   : > { %v613_v31 = vadd.f32 %v3475_v37, %v612_v27  ;;  %v429_v27 = vadd.f32 %v3395_v52, %v428_v25 }
 0x1a8   : > { %v679_v36 = vmul.f32 0.1, %v613_v31 }
 0x1aa   : > { %v711_v44 = vmax.f32 %v613_v31, %v679_v36  ;;  %v461_v31 = vmul.f32 0.1, %v427_v26  ;;  %v462_v36 = vmul.f32 0.1, %v429_v27 }
 0x1ac   : > { %v738_v46 = vpack.c.bf16 %v711_v44, %v710_v41  ;;  %v3543_v45 = vmax.f32 %v427_v26, %v461_v31  ;;  %v3553_v31 = vld [vmem:[#allocation7 + $0x2] ss:$0 sm:$0xff] }
 0x1ad   : > { %v615_v47 = vpop.f32.mrf.mxu1 }
 0x1ae   : > { %848 = vmatmul.bf16.gmra.mxu2 %v738_v46  ;;  %v616_v56 = vadd.f32 %v3475_v37, %v615_v47  ;;  %v3545_v46 = vmax.f32 %v429_v27, %v462_v36 }
 0x1b0   : > { %654 = vmatmul.bf16.gmra.mxu1 %v508_v50  ;;  %v680_v2 = vmul.f32 0.1, %v616_v56 }
 0x1b2   : > { %v712_v14 = vmax.f32 %v616_v56, %v680_v2  ;;  %v510_v56 = vpack.c.bf16 %v3545_v46, %v3543_v45  ;;  %v2911_v2 = vld [vmem:[#allocation5 + $0xc8] sm:$0xff] }
 0x1b3   : > { %1097 = vmatpush.bf16.msrb.mxu3 %v2911_v2 }
 0x1b5   : > { %v617_v63 = vpop.f32.mrf.mxu1 }
 0x1b6   : > { %v618_v3 = vadd.f32 %v3475_v37, %v617_v63 }
 0x1b8   : > { %v681_v4 = vmul.f32 0.1, %v618_v3 }
 0x1ba   : > { %v713_v17 = vmax.f32 %v618_v3, %v681_v4 }
 0x1bc   : > { %v739_v18 = vpack.c.bf16 %v713_v17, %v712_v14  ;;  %v2910_v17 = vld [vmem:[#allocation5 + $0xc0] sm:$0xff] }
 0x1bd   : > { %v620_v19 = vpop.f32.mrf.mxu1  ;;  %1098 = vmatpush.bf16.msrb.mxu3 %v2910_v17 }
 0x1be   : > { %853 = vmatmul.bf16.gmra.mxu2 %v739_v18  ;;  %v621_v28 = vadd.f32 %v3475_v37, %v620_v19 }
 0x1c0   : > { %659 = vmatmul.bf16.gmra.mxu1 %v509_v22  ;;  %v682_v38 = vmul.f32 0.1, %v621_v28 }
 0x1c2   : > { %v714_v47 = vmax.f32 %v621_v28, %v682_v38 }
 0x1c5   : > { %v622_v30 = vpop.f32.mrf.mxu1 }
 0x1c6   : > { %v623_v41 = vadd.f32 %v3475_v37, %v622_v30 }
 0x1c8   : > { %v683_v44 = vmul.f32 0.1, %v623_v41 }
 0x1ca   : > { %v715_v50 = vmax.f32 %v623_v41, %v683_v44 }
 0x1cc   : > { %v740_v55 = vpack.c.bf16 %v715_v50, %v714_v47 }
 0x1cd   : > { %v625_v52 = vpop.f32.mrf.mxu1 }
 0x1ce   : > { %858 = vmatmul.bf16.gmra.mxu2 %v740_v55  ;;  %v626_v57 = vadd.f32 %v3475_v37, %v625_v52 }
 0x1d0   : > { %664 = vmatmul.bf16.gmra.mxu1 %v510_v56  ;;  %v684_v63 = vmul.f32 0.1, %v626_v57 }
 0x1d2   : > { %v716_v3 = vmax.f32 %v626_v57, %v684_v63 }
 0x1d5   : > { %v627_v58 = vpop.f32.mrf.mxu1 }
 0x1d6   : > { %v628_v0 = vadd.f32 %v3475_v37, %v627_v58 }
 0x1d8   : > { %v685_v1 = vmul.f32 0.1, %v628_v0 }
 0x1da   : > { %v717_v4 = vmax.f32 %v628_v0, %v685_v1 }
 0x1dc   : > { %v741_v9 = vpack.c.bf16 %v717_v4, %v716_v3 }
 0x1dd   : > { %v630_v14 = vpop.f32.mrf.mxu1 }
 0x1de   : > { %863 = vmatmul.bf16.gmra.mxu2 %v741_v9  ;;  %v631_v18 = vadd.f32 %v3475_v37, %v630_v14 }
 0x1e0   : > { %v686_v22 = vmul.f32 0.1, %v631_v18 }
 0x1e2   : > { %v718_v27 = vmax.f32 %v631_v18, %v686_v22 }
 0x1e5   : > { %v632_v19 = vpop.f32.mrf.mxu1 }
 0x1e6   : > { %v633_v25 = vadd.f32 %v3475_v37, %v632_v19 }
 0x1e8   : > { %v687_v26 = vmul.f32 0.1, %v633_v25 }
 0x1ea   : > { %v719_v28 = vmax.f32 %v633_v25, %v687_v26 }
 0x1ec   : > { %v742_v29 = vpack.c.bf16 %v719_v28, %v718_v27 }
 0x1ed   : > { %v635_v30 = vpop.f32.mrf.mxu1 }
 0x1ee   : > { %868 = vmatmul.bf16.gmra.mxu2 %v742_v29  ;;  %v636_v38 = vadd.f32 %v3475_v37, %v635_v30 }
 0x1f0   : > { %v688_v47 = vmul.f32 0.1, %v636_v38 }
 0x1f1   : > { %v829_v36 = vpop.f32.mrf.mxu2 }
 0x1f2   : > { %v830_v41 = vadd.f32 %v3553_v31, %v829_v36  ;;  %v720_v56 = vmax.f32 %v636_v38, %v688_v47  ;;  %v2933_v36 = vld [vmem:[#allocation5 + $0x178] sm:$0xff] }
 0x1f3   : > { %1601 = vmatpush.bf16.msra.mxu1 %v2933_v36 }
 0x1f4   : > { %v909_v54 = vadd.f32 %v830_v41, %v3399_v59 }
 0x1f5   : > { %v637_v44 = vpop.f32.mrf.mxu1 }
 0x1f6   : > { %v638_v50 = vadd.f32 %v3475_v37, %v637_v44  ;;  %v941_v63 = vmul.f32 0.1, %v909_v54 }
 0x1f8   : > { %v689_v55 = vmul.f32 0.1, %v638_v50  ;;  %v3561_v4 = vmax.f32 %v909_v54, %v941_v63 }
 0x1f9   : > { %v831_v52 = vpop.f32.mrf.mxu2 }
 0x1fa   : > { %v721_v57 = vmax.f32 %v638_v50, %v689_v55  ;;  %v832_v58 = vadd.f32 %v3553_v31, %v831_v52 }
 0x1fc   : > { %v910_v0 = vadd.f32 %v832_v58, %v3401_v60  ;;  %v743_v1 = vpack.c.bf16 %v721_v57, %v720_v56 }
 0x1fd   : > { %v640_v2 = vpop.f32.mrf.mxu1 }
 0x1fe   : > { %v942_v3 = vmul.f32 0.1, %v910_v0  ;;  %873 = vmatmul.bf16.gmra.mxu2 %v743_v1  ;;  %v641_v59 = vadd.f32 %v3475_v37, %v640_v2 }
 0x200   : > { %v3563_v9 = vmax.f32 %v910_v0, %v942_v3  ;;  %v690_v22 = vmul.f32 0.1, %v641_v59 }
 0x201   : > { %v834_v14 = vpop.f32.mrf.mxu2 }
 0x202   : > { %v1005_v17 = vpack.c.bf16 %v3563_v9, %v3561_v4  ;;  %v835_v18 = vadd.f32 %v3553_v31, %v834_v14  ;;  %v722_v28 = vmax.f32 %v641_v59, %v690_v22 }
 0x204   : > { %1099 = vmatmul.bf16.vlgmr.msrb.gmra.mxu3 %v1005_v17  ;;  %v911_v25 = vadd.f32 %v835_v18, %v3409_v7 }
 0x205   : > { %v642_v19 = vpop.f32.mrf.mxu1 }
 0x206   : > { %v643_v60 = vadd.f32 %v3475_v37, %v642_v19  ;;  %v943_v38 = vmul.f32 0.1, %v911_v25 }
 0x208   : > { %v691_v26 = vmul.f32 0.1, %v643_v60  ;;  %v3573_v54 = vmax.f32 %v911_v25, %v943_v38 }
 0x209   : > { %v836_v27 = vpop.f32.mrf.mxu2 }
 0x20a   : > { %v723_v29 = vmax.f32 %v643_v60, %v691_v26  ;;  %v837_v30 = vadd.f32 %v3553_v31, %v836_v27 }
 0x20c   : > { %v912_v41 = vadd.f32 %v837_v30, %v3411_v8  ;;  %v744_v44 = vpack.c.bf16 %v723_v29, %v722_v28 }
 0x20d   : > { %v645_v47 = vpop.f32.mrf.mxu1 }
 0x20e   : > { %878 = vmatmul.bf16.gmra.mxu2 %v744_v44  ;;  %v944_v50 = vmul.f32 0.1, %v912_v41  ;;  %v646_v52 = vadd.f32 %v3475_v37, %v645_v47 }
 0x210   : > { %v3575_v55 = vmax.f32 %v912_v41, %v944_v50  ;;  %v692_v8 = vmul.f32 0.1, %v646_v52 }
 0x211   : > { %v839_v7 = vpop.f32.mrf.mxu2 }
 0x212   : > { %v1006_v56 = vpack.c.bf16 %v3575_v55, %v3573_v54  ;;  %v840_v57 = vadd.f32 %v3553_v31, %v839_v7  ;;  %v724_v3 = vmax.f32 %v646_v52, %v692_v8  ;;  %v2932_v52 = vld [vmem:[#allocation5 + $0x170] sm:$0xff] }
 0x213   : > { %1602 = vmatpush.bf16.msra.mxu1 %v2932_v52 }
 0x214   : > { %1104 = vmatmul.bf16.gmra.mxu3 %v1006_v56  ;;  %v913_v0 = vadd.f32 %v840_v57, %v3419_v20 }
 0x215   : > { %v647_v58 = vpop.f32.mrf.mxu1 }
 0x216   : > { %v648_v63 = vadd.f32 %v3475_v37, %v647_v58  ;;  %v945_v17 = vmul.f32 0.1, %v913_v0 }
 0x218   : > { %v693_v1 = vmul.f32 0.1, %v648_v63  ;;  %v3585_v25 = vmax.f32 %v913_v0, %v945_v17 }
 0x219   : > { %v841_v2 = vpop.f32.mrf.mxu2 }
 0x21a   : > { %v725_v14 = vmax.f32 %v648_v63, %v693_v1  ;;  %v842_v59 = vadd.f32 %v3553_v31, %v841_v2 }
 0x21c   : > { %v914_v18 = vadd.f32 %v842_v59, %v3421_v21  ;;  %v745_v19 = vpack.c.bf16 %v725_v14, %v724_v3 }
 0x21d   : > { %v650_v22 = vpop.f32.mrf.mxu1 }
 0x21e   : > { %883 = vmatmul.bf16.gmra.mxu2 %v745_v19  ;;  %v946_v60 = vmul.f32 0.1, %v914_v18  ;;  %v651_v20 = vadd.f32 %v3475_v37, %v650_v22 }
 0x220   : > { %v3587_v26 = vmax.f32 %v914_v18, %v946_v60  ;;  %v694_v36 = vmul.f32 0.1, %v651_v20 }
 0x221   : > { %v844_v27 = vpop.f32.mrf.mxu2 }
 0x222   : > { %v1007_v28 = vpack.c.bf16 %v3587_v26, %v3585_v25  ;;  %v845_v29 = vadd.f32 %v3553_v31, %v844_v27  ;;  %v726_v47 = vmax.f32 %v651_v20, %v694_v36 }
 0x224   : > { %1109 = vmatmul.bf16.gmra.mxu3 %v1007_v28  ;;  %v915_v38 = vadd.f32 %v845_v29, %v3429_v34  ;;  %v2925_v28 = vld [vmem:[#allocation5 + $0x138] sm:$0xff] }
 0x225   : > { %v652_v30 = vpop.f32.mrf.mxu1  ;;  %1330 = vmatpush.bf16.msrb.mxu0 %v2925_v28 }
 0x226   : > { %v653_v21 = vadd.f32 %v3475_v37, %v652_v30  ;;  %v947_v56 = vmul.f32 0.1, %v915_v38 }
 0x228   : > { %v695_v41 = vmul.f32 0.1, %v653_v21  ;;  %v3597_v0 = vmax.f32 %v915_v38, %v947_v56 }
 0x229   : > { %v846_v44 = vpop.f32.mrf.mxu2 }
 0x22a   : > { %v727_v50 = vmax.f32 %v653_v21, %v695_v41  ;;  %v847_v7 = vadd.f32 %v3553_v31, %v846_v44  ;;  %v2924_v41 = vld [vmem:[#allocation5 + $0x130] sm:$0xff] }
 0x22b   : > { %1331 = vmatpush.bf16.msrb.mxu0 %v2924_v41 }
 0x22c   : > { %v916_v57 = vadd.f32 %v847_v7, %v3431_v35  ;;  %v746_v58 = vpack.c.bf16 %v727_v50, %v726_v47 }
 0x22d   : > { %v655_v8 = vpop.f32.mrf.mxu1 }
 0x22e   : > { %888 = vmatmul.bf16.gmra.mxu2 %v746_v58  ;;  %v948_v63 = vmul.f32 0.1, %v916_v57  ;;  %v656_v2 = vadd.f32 %v3475_v37, %v655_v8  ;;  %v2923_v58 = vld [vmem:[#allocation5 + $0x128] sm:$0xff] }
 0x22f   : > { %v2931_v8 = vld [vmem:[#allocation5 + $0x168] sm:$0xff]  ;;  %1332 = vmatpush.bf16.msrb.mxu0 %v2923_v58 }
 0x230   : > { %v3599_v1 = vmax.f32 %v916_v57, %v948_v63  ;;  %v696_v35 = vmul.f32 0.1, %v656_v2  ;;  %1603 = vmatpush.bf16.msra.mxu1 %v2931_v8 }
 0x231   : > { %v849_v34 = vpop.f32.mrf.mxu2 }
 0x232   : > { %v1008_v3 = vpack.c.bf16 %v3599_v1, %v3597_v0  ;;  %v850_v14 = vadd.f32 %v3553_v31, %v849_v34  ;;  %v728_v60 = vmax.f32 %v656_v2, %v696_v35 }
 0x234   : > { %1114 = vmatmul.bf16.gmra.mxu3 %v1008_v3  ;;  %v917_v18 = vadd.f32 %v850_v14, %v3439_v48 }
 0x235   : > { %v657_v59 = vpop.f32.mrf.mxu1 }
 0x236   : > { %v658_v17 = vadd.f32 %v3475_v37, %v657_v59  ;;  %v949_v29 = vmul.f32 0.1, %v917_v18 }
 0x238   : > { %v697_v19 = vmul.f32 0.1, %v658_v17  ;;  %v3609_v44 = vmax.f32 %v917_v18, %v949_v29 }
 0x239   : > { %v851_v22 = vpop.f32.mrf.mxu2 }
 0x23a   : > { %v729_v27 = vmax.f32 %v658_v17, %v697_v19  ;;  %v852_v20 = vadd.f32 %v3553_v31, %v851_v22  ;;  %v2922_v19 = vld [vmem:[#allocation5 + $0x120] sm:$0xff] }
 0x23b   : > { %1333 = vmatpush.bf16.msrb.mxu0 %v2922_v19  ;;  %v2930_v19 = vld [vmem:[#allocation5 + $0x160] sm:$0xff] }
 0x23c   : > { %v918_v30 = vadd.f32 %v852_v20, %v3441_v49  ;;  %v747_v36 = vpack.c.bf16 %v729_v27, %v728_v60  ;;  %1604 = vmatpush.bf16.msra.mxu1 %v2930_v19 }
 0x23d   : > { %v660_v21 = vpop.f32.mrf.mxu1 }
 0x23e   : > { %893 = vmatmul.bf16.gmra.mxu2 %v747_v36  ;;  %v950_v38 = vmul.f32 0.1, %v918_v30  ;;  %v661_v50 = vadd.f32 %v3475_v37, %v660_v21 }
 0x240   : > { %v3611_v47 = vmax.f32 %v918_v30, %v950_v38  ;;  %v698_v56 = vmul.f32 0.1, %v661_v50 }
 0x241   : > { %v854_v48 = vpop.f32.mrf.mxu2 }
 0x242   : > { %v1009_v7 = vpack.c.bf16 %v3611_v47, %v3609_v44  ;;  %v855_v52 = vadd.f32 %v3553_v31, %v854_v48  ;;  %v730_v3 = vmax.f32 %v661_v50, %v698_v56  ;;  %v2921_v48 = vld [vmem:[#allocation5 + $0x118] sm:$0xff] }
 0x243   : > { %1334 = vmatpush.bf16.msrb.mxu0 %v2921_v48 }
 0x244   : > { %1119 = vmatmul.bf16.gmra.mxu3 %v1009_v7  ;;  %v919_v63 = vadd.f32 %v855_v52, %v3447_v61 }
 0x245   : > { %v662_v49 = vpop.f32.mrf.mxu1 }
 0x246   : > { %v663_v57 = vadd.f32 %v3475_v37, %v662_v49  ;;  %v951_v35 = vmul.f32 0.1, %v919_v63 }
 0x248   : > { %v699_v34 = vmul.f32 0.1, %v663_v57  ;;  %v3621_v27 = vmax.f32 %v919_v63, %v951_v35 }
 0x249   : > { %v856_v2 = vpop.f32.mrf.mxu2 }
 0x24a   : > { %v731_v14 = vmax.f32 %v663_v57, %v699_v34  ;;  %v857_v59 = vadd.f32 %v3553_v31, %v856_v2 }
 0x24c   : > { %v920_v17 = vadd.f32 %v857_v59, %v3449_v62  ;;  %v748_v18 = vpack.c.bf16 %v731_v14, %v730_v3 }
 0x24d   : > { %v665_v22 = vpop.f32.mrf.mxu1 }
 0x24e   : > { %898 = vmatmul.bf16.gmra.mxu2 %v748_v18  ;;  %v952_v60 = vmul.f32 0.1, %v920_v17  ;;  %v666_v28 = vadd.f32 %v3475_v37, %v665_v22  ;;  %v2919_v18 = vld [vmem:[#allocation5 + $0x108] sm:$0xff] }
 0x250   : > { %v3623_v61 = vmax.f32 %v920_v17, %v952_v60  ;;  %v700_v36 = vmul.f32 0.1, %v666_v28 }
 0x251   : > { %v859_v20 = vpop.f32.mrf.mxu2 }
 0x252   : > { %v1010_v29 = vpack.c.bf16 %v3623_v61, %v3621_v27  ;;  %v860_v30 = vadd.f32 %v3553_v31, %v859_v20  ;;  %v732_v7 = vmax.f32 %v666_v28, %v700_v36 }
 0x254   : > { %1124 = vmatmul.bf16.gmra.mxu3 %v1010_v29  ;;  %v921_v38 = vadd.f32 %v860_v30, %v3455_v10 }
 0x255   : > { %v667_v62 = vpop.f32.mrf.mxu1 }
 0x256   : > { %v668_v21 = vadd.f32 %v3475_v37, %v667_v62  ;;  %v953_v56 = vmul.f32 0.1, %v921_v38  ;;  %v2920_v37 = vld [vmem:[#allocation5 + $0x110] sm:$0xff] }
 0x257   : > { %1335 = vmatpush.bf16.msrb.mxu0 %v2920_v37 }
 0x258   : > { %v701_v41 = vmul.f32 0.1, %v668_v21  ;;  %v3633_v63 = vmax.f32 %v921_v38, %v953_v56 }
 0x259   : > { %v861_v50 = vpop.f32.mrf.mxu2 }
 0x25a   : > { %v733_v52 = vmax.f32 %v668_v21, %v701_v41  ;;  %v862_v49 = vadd.f32 %v3553_v31, %v861_v50 }
 0x25b   : > { %1336 = vmatpush.bf16.msrb.mxu0 %v2919_v18 }
 0x25c   : > { %v922_v57 = vadd.f32 %v862_v49, %v3457_v11  ;;  %v749_v58 = vpack.c.bf16 %v733_v52, %v732_v7 }
 0x25e   : > { %903 = vmatmul.bf16.gmra.mxu2 %v749_v58  ;;  %v954_v8 = vmul.f32 0.1, %v922_v57 }
 0x260   : > { %v3635_v34 = vmax.f32 %v922_v57, %v954_v8  ;;  %v3661_v57 = vld [vmem:[#allocation7 + $0x3] ss:$0 sm:$0xff] }
 0x261   : > { %v864_v10 = vpop.f32.mrf.mxu2 }
 0x262   : > { %v1011_v2 = vpack.c.bf16 %v3635_v34, %v3633_v63  ;;  %v865_v3 = vadd.f32 %v3553_v31, %v864_v10 }
 0x264   : > { %1129 = vmatmul.bf16.gmra.mxu3 %v1011_v2  ;;  %v923_v14 = vadd.f32 %v865_v3, %v3463_v23  ;;  %v2918_v23 = vld [vmem:[#allocation5 + $0x100] sm:$0xff]  ;;  %v2929_v2 = vld [vmem:[#allocation5 + $0x158] sm:$0xff] }
 0x265   : > { %1337 = vmatpush.bf16.msrb.mxu0 %v2918_v23  ;;  %1605 = vmatpush.bf16.msra.mxu1 %v2929_v2 }
 0x266   : > { %v955_v35 = vmul.f32 0.1, %v923_v14 }
 0x268   : > { %v3643_v60 = vmax.f32 %v923_v14, %v955_v35 }
 0x269   : > { %v866_v59 = vpop.f32.mrf.mxu2 }
 0x26a   : > { %v867_v11 = vadd.f32 %v3553_v31, %v866_v59 }
 0x26c   : > { %v924_v17 = vadd.f32 %v867_v11, %v3465_v24 }
 0x26e   : > { %v956_v22 = vmul.f32 0.1, %v924_v17 }
 0x270   : > { %v3645_v20 = vmax.f32 %v924_v17, %v956_v22 }
 0x271   : > { %v869_v28 = vpop.f32.mrf.mxu2 }
 0x272   : > { %v1012_v29 = vpack.c.bf16 %v3645_v20, %v3643_v60  ;;  %v870_v30 = vadd.f32 %v3553_v31, %v869_v28 }
 0x274   : > { %1134 = vmatmul.bf16.gmra.mxu3 %v1012_v29  ;;  %v925_v24 = vadd.f32 %v870_v30, %v3471_v32 }
 0x276   : > { %v957_v21 = vmul.f32 0.1, %v925_v24 }
 0x278   : > { %v3653_v48 = vmax.f32 %v925_v24, %v957_v21  ;;  %v2941_v24 = vld [vmem:[#allocation5 + $0x1b8] sm:$0xff] }
 0x279   : > { %v871_v62 = vpop.f32.mrf.mxu2  ;;  %1840 = vmatpush.bf16.msra.mxu2 %v2941_v24 }
 0x27a   : > { %v872_v36 = vadd.f32 %v3553_v31, %v871_v62 }
 0x27c   : > { %v926_v38 = vadd.f32 %v872_v36, %v3473_v33 }
 0x27e   : > { %v958_v41 = vmul.f32 0.1, %v926_v38 }
 0x280   : > { %v3655_v50 = vmax.f32 %v926_v38, %v958_v41 }
 0x281   : > { %v874_v7 = vpop.f32.mrf.mxu2 }
 0x282   : > { %v1013_v52 = vpack.c.bf16 %v3655_v50, %v3653_v48  ;;  %v875_v49 = vadd.f32 %v3553_v31, %v874_v7 }
 0x284   : > { %1139 = vmatmul.bf16.gmra.mxu3 %v1013_v52  ;;  %v927_v32 = vadd.f32 %v875_v49, %v3483_v51 }
 0x286   : > { %v959_v8 = vmul.f32 0.1, %v927_v32 }
 0x287   : > { %v1100_v56 = vpop.f32.mrf.mxu3 }
 0x288   : > { %v1101_v37 = vadd.f32 %v3661_v57, %v1100_v56  ;;  %v3666_v59 = vmax.f32 %v927_v32, %v959_v8 }
 0x289   : > { %v876_v58 = vpop.f32.mrf.mxu2 }
 0x28a   : > { %v877_v33 = vadd.f32 %v3553_v31, %v876_v58  ;;  %v1180_v11 = vmul.f32 0.1, %v1101_v37 }
 0x28c   : > { %v928_v10 = vadd.f32 %v877_v33, %v3485_v53  ;;  %v1212_v22 = vmax.f32 %v1101_v37, %v1180_v11 }
 0x28e   : > { %v960_v3 = vmul.f32 0.1, %v928_v10 }
 0x28f   : > { %v1102_v14 = vpop.f32.mrf.mxu3 }
 0x290   : > { %v3668_v35 = vmax.f32 %v928_v10, %v960_v3  ;;  %v1103_v51 = vadd.f32 %v3661_v57, %v1102_v14 }
 0x291   : > { %v879_v17 = vpop.f32.mrf.mxu2 }
 0x292   : > { %v1181_v18 = vmul.f32 0.1, %v1103_v51  ;;  %v1014_v19 = vpack.c.bf16 %v3668_v35, %v3666_v59  ;;  %v880_v53 = vadd.f32 %v3553_v31, %v879_v17 }
 0x294   : > { %v1213_v28 = vmax.f32 %v1103_v51, %v1181_v18  ;;  %1144 = vmatmul.bf16.gmra.mxu3 %v1014_v19  ;;  %v929_v30 = vadd.f32 %v880_v53, %v3493_v15 }
 0x296   : > { %v1244_v29 = vpack.c.bf16 %v1213_v28, %v1212_v22  ;;  %v961_v21 = vmul.f32 0.1, %v929_v30  ;;  %v2928_v22 = vld [vmem:[#allocation5 + $0x150] sm:$0xff] }
 0x297   : > { %v1105_v23 = vpop.f32.mrf.mxu3  ;;  %1606 = vmatpush.bf16.msra.mxu1 %v2928_v22 }
 0x298   : > { %1338 = vmatmul.bf16.vlgmr.msrb.gmra.mxu0 %v1244_v29  ;;  %v1106_v38 = vadd.f32 %v3661_v57, %v1105_v23  ;;  %v3678_v49 = vmax.f32 %v929_v30, %v961_v21 }
 0x299   : > { %v881_v62 = vpop.f32.mrf.mxu2 }
 0x29a   : > { %v882_v36 = vadd.f32 %v3553_v31, %v881_v62  ;;  %v1182_v56 = vmul.f32 0.1, %v1106_v38 }
 0x29c   : > { %v930_v41 = vadd.f32 %v882_v36, %v3495_v16  ;;  %v1214_v37 = vmax.f32 %v1106_v38, %v1182_v56  ;;  %v2940_v56 = vld [vmem:[#allocation5 + $0x1b0] sm:$0xff] }
 0x29d   : > { %1841 = vmatpush.bf16.msra.mxu2 %v2940_v56 }
 0x29e   : > { %v962_v7 = vmul.f32 0.1, %v930_v41 }
 0x29f   : > { %v1107_v52 = vpop.f32.mrf.mxu3 }
 0x2a0   : > { %v3680_v32 = vmax.f32 %v930_v41, %v962_v7  ;;  %v1108_v15 = vadd.f32 %v3661_v57, %v1107_v52 }
 0x2a1   : > { %v884_v58 = vpop.f32.mrf.mxu2 }
 0x2a2   : > { %v1183_v33 = vmul.f32 0.1, %v1108_v15  ;;  %v1015_v8 = vpack.c.bf16 %v3680_v32, %v3678_v49  ;;  %v885_v10 = vadd.f32 %v3553_v31, %v884_v58 }
 0x2a4   : > { %1149 = vmatmul.bf16.gmra.mxu3 %v1015_v8  ;;  %v1215_v2 = vmax.f32 %v1108_v15, %v1183_v33  ;;  %v931_v14 = vadd.f32 %v885_v10, %v3503_v42 }
 0x2a6   : > { %v1245_v16 = vpack.c.bf16 %v1215_v2, %v1214_v37  ;;  %v963_v17 = vmul.f32 0.1, %v931_v14 }
 0x2a7   : > { %v1110_v3 = vpop.f32.mrf.mxu3 }
 0x2a8   : > { %1343 = vmatmul.bf16.gmra.mxu0 %v1245_v16  ;;  %v1111_v18 = vadd.f32 %v3661_v57, %v1110_v3  ;;  %v3690_v29 = vmax.f32 %v931_v14, %v963_v17 }
 0x2a9   : > { %v886_v11 = vpop.f32.mrf.mxu2 }
 0x2aa   : > { %v887_v51 = vadd.f32 %v3553_v31, %v886_v11  ;;  %v1184_v23 = vmul.f32 0.1, %v1111_v18 }
 0x2ac   : > { %v932_v19 = vadd.f32 %v887_v51, %v3505_v43  ;;  %v1216_v21 = vmax.f32 %v1111_v18, %v1184_v23 }
 0x2ae   : > { %v964_v28 = vmul.f32 0.1, %v932_v19 }
 0x2af   : > { %v1112_v53 = vpop.f32.mrf.mxu3 }
 0x2b0   : > { %v3692_v30 = vmax.f32 %v932_v19, %v964_v28  ;;  %v1113_v42 = vadd.f32 %v3661_v57, %v1112_v53 }
 0x2b1   : > { %v889_v24 = vpop.f32.mrf.mxu2 }
 0x2b2   : > { %v1185_v62 = vmul.f32 0.1, %v1113_v42  ;;  %v1016_v36 = vpack.c.bf16 %v3692_v30, %v3690_v29  ;;  %v890_v38 = vadd.f32 %v3553_v31, %v889_v24 }
 0x2b4   : > { %1154 = vmatmul.bf16.gmra.mxu3 %v1016_v36  ;;  %v1217_v43 = vmax.f32 %v1113_v42, %v1185_v62  ;;  %v933_v52 = vadd.f32 %v890_v38, %v3513_v5 }
 0x2b6   : > { %v1246_v41 = vpack.c.bf16 %v1217_v43, %v1216_v21  ;;  %v965_v33 = vmul.f32 0.1, %v933_v52  ;;  %v2927_v21 = vld [vmem:[#allocation5 + $0x148] sm:$0xff] }
 0x2b7   : > { %v1115_v7 = vpop.f32.mrf.mxu3  ;;  %1607 = vmatpush.bf16.msra.mxu1 %v2927_v21 }
 0x2b8   : > { %1348 = vmatmul.bf16.gmra.mxu0 %v1246_v41  ;;  %v1116_v8 = vadd.f32 %v3661_v57, %v1115_v7  ;;  %v3702_v16 = vmax.f32 %v933_v52, %v965_v33 }
 0x2b9   : > { %v891_v15 = vpop.f32.mrf.mxu2 }
 0x2ba   : > { %v892_v58 = vadd.f32 %v3553_v31, %v891_v15  ;;  %v1186_v3 = vmul.f32 0.1, %v1116_v8 }
 0x2bc   : > { %v934_v37 = vadd.f32 %v892_v58, %v3515_v6  ;;  %v1218_v18 = vmax.f32 %v1116_v8, %v1186_v3 }
 0x2be   : > { %v966_v10 = vmul.f32 0.1, %v934_v37 }
 0x2bf   : > { %v1117_v2 = vpop.f32.mrf.mxu3 }
 0x2c0   : > { %v3704_v14 = vmax.f32 %v934_v37, %v966_v10  ;;  %v1118_v5 = vadd.f32 %v3661_v57, %v1117_v2  ;;  %v2939_v37 = vld [vmem:[#allocation5 + $0x1a8] sm:$0xff] }
 0x2c1   : > { %v894_v11 = vpop.f32.mrf.mxu2  ;;  %1842 = vmatpush.bf16.msra.mxu2 %v2939_v37 }
 0x2c2   : > { %v1187_v51 = vmul.f32 0.1, %v1118_v5  ;;  %v1017_v17 = vpack.c.bf16 %v3704_v14, %v3702_v16  ;;  %v895_v19 = vadd.f32 %v3553_v31, %v894_v11 }
 0x2c4   : > { %1159 = vmatmul.bf16.gmra.mxu3 %v1017_v17  ;;  %v1219_v22 = vmax.f32 %v1118_v5, %v1187_v51  ;;  %v935_v53 = vadd.f32 %v895_v19, %v3523_v39 }
 0x2c6   : > { %v1247_v6 = vpack.c.bf16 %v1219_v22, %v1218_v18  ;;  %v967_v24 = vmul.f32 0.1, %v935_v53 }
 0x2c7   : > { %v1120_v28 = vpop.f32.mrf.mxu3 }
 0x2c8   : > { %1353 = vmatmul.bf16.gmra.mxu0 %v1247_v6  ;;  %v1121_v62 = vadd.f32 %v3661_v57, %v1120_v28  ;;  %v3714_v41 = vmax.f32 %v935_v53, %v967_v24 }
 0x2c9   : > { %v896_v23 = vpop.f32.mrf.mxu2 }
 0x2ca   : > { %v897_v42 = vadd.f32 %v3553_v31, %v896_v23  ;;  %v1188_v7 = vmul.f32 0.1, %v1121_v62 }
 0x2cc   : > { %v936_v36 = vadd.f32 %v897_v42, %v3525_v40  ;;  %v1220_v33 = vmax.f32 %v1121_v62, %v1188_v7 }
 0x2ce   : > { %v968_v38 = vmul.f32 0.1, %v936_v36 }
 0x2cf   : > { %v1122_v43 = vpop.f32.mrf.mxu3 }
 0x2d0   : > { %v3716_v52 = vmax.f32 %v936_v36, %v968_v38  ;;  %v1123_v39 = vadd.f32 %v3661_v57, %v1122_v43 }
 0x2d1   : > { %v899_v56 = vpop.f32.mrf.mxu2 }
 0x2d2   : > { %v1189_v15 = vmul.f32 0.1, %v1123_v39  ;;  %v1018_v58 = vpack.c.bf16 %v3716_v52, %v3714_v41  ;;  %v900_v8 = vadd.f32 %v3553_v31, %v899_v56 }
 0x2d4   : > { %1164 = vmatmul.bf16.gmra.mxu3 %v1018_v58  ;;  %v1221_v40 = vmax.f32 %v1123_v39, %v1189_v15  ;;  %v937_v3 = vadd.f32 %v900_v8, %v3533_v12 }
 0x2d6   : > { %v1248_v10 = vpack.c.bf16 %v1221_v40, %v1220_v33  ;;  %v969_v51 = vmul.f32 0.1, %v937_v3  ;;  %v2926_v33 = vld [vmem:[#allocation5 + $0x140] sm:$0xff] }
 0x2d7   : > { %v1125_v2 = vpop.f32.mrf.mxu3  ;;  %1608 = vmatpush.bf16.msra.mxu1 %v2926_v33 }
 0x2d8   : > { %1358 = vmatmul.bf16.gmra.mxu0 %v1248_v10  ;;  %v1126_v17 = vadd.f32 %v3661_v57, %v1125_v2  ;;  %v3726_v6 = vmax.f32 %v937_v3, %v969_v51 }
 0x2d9   : > { %v901_v5 = vpop.f32.mrf.mxu2 }
 0x2da   : > { %v902_v11 = vadd.f32 %v3553_v31, %v901_v5  ;;  %v1190_v28 = vmul.f32 0.1, %v1126_v17 }
 0x2dc   : > { %v938_v18 = vadd.f32 %v902_v11, %v3535_v13  ;;  %v1222_v62 = vmax.f32 %v1126_v17, %v1190_v28 }
 0x2de   : > { %v970_v19 = vmul.f32 0.1, %v938_v18 }
 0x2df   : > { %v1127_v22 = vpop.f32.mrf.mxu3 }
 0x2e0   : > { %v3728_v53 = vmax.f32 %v938_v18, %v970_v19  ;;  %v1128_v23 = vadd.f32 %v3661_v57, %v1127_v22  ;;  %v2938_v18 = vld [vmem:[#allocation5 + $0x1a0] sm:$0xff] }
 0x2e1   : > { %v904_v42 = vpop.f32.mrf.mxu2  ;;  %1843 = vmatpush.bf16.msra.mxu2 %v2938_v18 }
 0x2e2   : > { %v1191_v12 = vmul.f32 0.1, %v1128_v23  ;;  %v1019_v24 = vpack.c.bf16 %v3728_v53, %v3726_v6  ;;  %v905_v36 = vadd.f32 %v3553_v31, %v904_v42 }
 0x2e4   : > { %1169 = vmatmul.bf16.gmra.mxu3 %v1019_v24  ;;  %v1223_v21 = vmax.f32 %v1128_v23, %v1191_v12  ;;  %v939_v43 = vadd.f32 %v905_v36, %v3543_v45 }
 0x2e6   : > { %v1249_v13 = vpack.c.bf16 %v1223_v21, %v1222_v62  ;;  %v971_v56 = vmul.f32 0.1, %v939_v43 }
 0x2e7   : > { %v1130_v38 = vpop.f32.mrf.mxu3 }
 0x2e8   : > { %1363 = vmatmul.bf16.gmra.mxu0 %v1249_v13  ;;  %v1131_v15 = vadd.f32 %v3661_v57, %v1130_v38  ;;  %v3738_v37 = vmax.f32 %v939_v43, %v971_v56  ;;  %v3749_v56 = vld [vmem:[#allocation7 + $0x4] ss:$0 sm:$0xff] }
 0x2e9   : > { %v906_v7 = vpop.f32.mrf.mxu2 }
 0x2ea   : > { %v907_v39 = vadd.f32 %v3553_v31, %v906_v7  ;;  %v1192_v10 = vmul.f32 0.1, %v1131_v15 }
 0x2ec   : > { %v940_v58 = vadd.f32 %v907_v39, %v3545_v46  ;;  %v1224_v5 = vmax.f32 %v1131_v15, %v1192_v10 }
 0x2ee   : > { %v972_v8 = vmul.f32 0.1, %v940_v58 }
 0x2ef   : > { %v1132_v40 = vpop.f32.mrf.mxu3 }
 0x2f0   : > { %v3740_v2 = vmax.f32 %v940_v58, %v972_v8  ;;  %v1133_v45 = vadd.f32 %v3661_v57, %v1132_v40 }
 0x2f2   : > { %v1193_v3 = vmul.f32 0.1, %v1133_v45  ;;  %v1020_v31 = vpack.c.bf16 %v3740_v2, %v3738_v37 }
 0x2f4   : > { %1174 = vmatmul.bf16.gmra.mxu3 %v1020_v31  ;;  %v1225_v11 = vmax.f32 %v1133_v45, %v1193_v3  ;;  %v2937_v45 = vld [vmem:[#allocation5 + $0x198] sm:$0xff] }
 0x2f5   : > { %1844 = vmatpush.bf16.msra.mxu2 %v2937_v45 }
 0x2f6   : > { %v1250_v51 = vpack.c.bf16 %v1225_v11, %v1224_v5 }
 0x2f7   : > { %v1135_v46 = vpop.f32.mrf.mxu3 }
 0x2f8   : > { %1368 = vmatmul.bf16.gmra.mxu0 %v1250_v51  ;;  %v1136_v17 = vadd.f32 %v3661_v57, %v1135_v46 }
 0x2fa   : > { %v1194_v22 = vmul.f32 0.1, %v1136_v17 }
 0x2fc   : > { %v1226_v42 = vmax.f32 %v1136_v17, %v1194_v22 }
 0x2ff   : > { %v1137_v19 = vpop.f32.mrf.mxu3 }
 0x300   : > { %v1138_v28 = vadd.f32 %v3661_v57, %v1137_v19 }
 0x302   : > { %v1195_v23 = vmul.f32 0.1, %v1138_v28 }
 0x304   : > { %v1227_v12 = vmax.f32 %v1138_v28, %v1195_v23 }
 0x306   : > { %v1251_v24 = vpack.c.bf16 %v1227_v12, %v1226_v42 }
 0x307   : > { %v1140_v62 = vpop.f32.mrf.mxu3 }
 0x308   : > { %1373 = vmatmul.bf16.gmra.mxu0 %v1251_v24  ;;  %v1141_v36 = vadd.f32 %v3661_v57, %v1140_v62 }
 0x30a   : > { %v1196_v13 = vmul.f32 0.1, %v1141_v36 }
 0x30c   : > { %v1228_v7 = vmax.f32 %v1141_v36, %v1196_v13  ;;  %v2949_v13 = vld [vmem:[#allocation5 + $0x1f8] sm:$0xff] }
 0x30d   : > { %2111 = vmatpush.bf16.msra.mxu3 %v2949_v13 }
 0x30f   : > { %v1142_v21 = vpop.f32.mrf.mxu3 }
 0x310   : > { %v1143_v38 = vadd.f32 %v3661_v57, %v1142_v21 }
 0x312   : > { %v1197_v43 = vmul.f32 0.1, %v1143_v38 }
 0x314   : > { %v1229_v39 = vmax.f32 %v1143_v38, %v1197_v43 }
 0x315   : > { %v1339_v15 = vpop.f32.mrf.mxu0 }
 0x316   : > { %v1252_v58 = vpack.c.bf16 %v1229_v39, %v1228_v7  ;;  %v1340_v8 = vadd.f32 %v3749_v56, %v1339_v15 }
 0x317   : > { %v1145_v33 = vpop.f32.mrf.mxu3 }
 0x318   : > { %1378 = vmatmul.bf16.gmra.mxu0 %v1252_v58  ;;  %v1419_v40 = vadd.f32 %v1340_v8, %v3561_v4  ;;  %v1146_v10 = vadd.f32 %v3661_v57, %v1145_v33 }
 0x31a   : > { %v1451_v11 = vmul.f32 0.1, %v1419_v40  ;;  %v1198_v51 = vmul.f32 0.1, %v1146_v10 }
 0x31c   : > { %v3757_v22 = vmax.f32 %v1419_v40, %v1451_v11  ;;  %v1230_v28 = vmax.f32 %v1146_v10, %v1198_v51 }
 0x31d   : > { %v1341_v3 = vpop.f32.mrf.mxu0 }
 0x31e   : > { %v1342_v31 = vadd.f32 %v3749_v56, %v1341_v3 }
 0x31f   : > { %v1147_v5 = vpop.f32.mrf.mxu3 }
 0x320   : > { %v1420_v46 = vadd.f32 %v1342_v31, %v3563_v9  ;;  %v1148_v17 = vadd.f32 %v3661_v57, %v1147_v5 }
 0x322   : > { %v1452_v18 = vmul.f32 0.1, %v1420_v46  ;;  %v1199_v19 = vmul.f32 0.1, %v1148_v17 }
 0x324   : > { %v3759_v4 = vmax.f32 %v1420_v46, %v1452_v18  ;;  %v1231_v23 = vmax.f32 %v1148_v17, %v1199_v19  ;;  %v2936_v18 = vld [vmem:[#allocation5 + $0x190] sm:$0xff] }
 0x325   : > { %v1344_v42 = vpop.f32.mrf.mxu0  ;;  %1845 = vmatpush.bf16.msra.mxu2 %v2936_v18 }
 0x326   : > { %v1515_v12 = vpack.c.bf16 %v3759_v4, %v3757_v22  ;;  %v1253_v24 = vpack.c.bf16 %v1231_v23, %v1230_v28  ;;  %v1345_v36 = vadd.f32 %v3749_v56, %v1344_v42 }
 0x327   : > { %v1150_v62 = vpop.f32.mrf.mxu3 }
 0x328   : > { %1383 = vmatmul.bf16.gmra.mxu0 %v1253_v24  ;;  %1609 = vmatmul.bf16.vlgmr.msra.gmra.mxu1 %v1515_v12  ;;  %v1421_v9 = vadd.f32 %v1345_v36, %v3573_v54  ;;  %v1151_v21 = vadd.f32 %v3661_v57, %v1150_v62 }
 0x32a   : > { %v1453_v39 = vmul.f32 0.1, %v1421_v9  ;;  %v1200_v15 = vmul.f32 0.1, %v1151_v21 }
 0x32c   : > { %v3769_v10 = vmax.f32 %v1421_v9, %v1453_v39  ;;  %v1232_v45 = vmax.f32 %v1151_v21, %v1200_v15 }
 0x32d   : > { %v1346_v38 = vpop.f32.mrf.mxu0 }
 0x32e   : > { %v1347_v43 = vadd.f32 %v3749_v56, %v1346_v38 }
 0x32f   : > { %v1152_v7 = vpop.f32.mrf.mxu3 }
 0x330   : > { %v1422_v58 = vadd.f32 %v1347_v43, %v3575_v55  ;;  %v1153_v33 = vadd.f32 %v3661_v57, %v1152_v7 }
 0x332   : > { %v1454_v8 = vmul.f32 0.1, %v1422_v58  ;;  %v1201_v40 = vmul.f32 0.1, %v1153_v33 }
 0x334   : > { %v3771_v54 = vmax.f32 %v1422_v58, %v1454_v8  ;;  %v1233_v3 = vmax.f32 %v1153_v33, %v1201_v40  ;;  %v2948_v8 = vld [vmem:[#allocation5 + $0x1f0] sm:$0xff] }
 0x335   : > { %v1349_v31 = vpop.f32.mrf.mxu0  ;;  %2112 = vmatpush.bf16.msra.mxu3 %v2948_v8 }
 0x336   : > { %v1254_v5 = vpack.c.bf16 %v1233_v3, %v1232_v45  ;;  %v1516_v11 = vpack.c.bf16 %v3771_v54, %v3769_v10  ;;  %v1350_v46 = vadd.f32 %v3749_v56, %v1349_v31 }
 0x337   : > { %v1155_v51 = vpop.f32.mrf.mxu3 }
 0x338   : > { %1388 = vmatmul.bf16.gmra.mxu0 %v1254_v5  ;;  %1614 = vmatmul.bf16.gmra.mxu1 %v1516_v11  ;;  %v1423_v55 = vadd.f32 %v1350_v46, %v3585_v25  ;;  %v1156_v17 = vadd.f32 %v3661_v57, %v1155_v51 }
 0x33a   : > { %v1455_v42 = vmul.f32 0.1, %v1423_v55  ;;  %v1202_v12 = vmul.f32 0.1, %v1156_v17 }
 0x33c   : > { %v3781_v21 = vmax.f32 %v1423_v55, %v1455_v42  ;;  %v1234_v13 = vmax.f32 %v1156_v17, %v1202_v12 }
 0x33d   : > { %v1351_v19 = vpop.f32.mrf.mxu0 }
 0x33e   : > { %v1352_v28 = vadd.f32 %v3749_v56, %v1351_v19 }
 0x33f   : > { %v1157_v23 = vpop.f32.mrf.mxu3 }
 0x340   : > { %v1424_v24 = vadd.f32 %v1352_v28, %v3587_v26  ;;  %v1158_v62 = vadd.f32 %v3661_v57, %v1157_v23 }
 0x342   : > { %v1456_v36 = vmul.f32 0.1, %v1424_v24  ;;  %v1203_v9 = vmul.f32 0.1, %v1158_v62 }
 0x344   : > { %v3783_v25 = vmax.f32 %v1424_v24, %v1456_v36  ;;  %v1235_v38 = vmax.f32 %v1158_v62, %v1203_v9  ;;  %v2935_v36 = vld [vmem:[#allocation5 + $0x188] sm:$0xff] }
 0x345   : > { %v1354_v43 = vpop.f32.mrf.mxu0  ;;  %1846 = vmatpush.bf16.msra.mxu2 %v2935_v36 }
 0x346   : > { %v1255_v7 = vpack.c.bf16 %v1235_v38, %v1234_v13  ;;  %v1517_v39 = vpack.c.bf16 %v3783_v25, %v3781_v21  ;;  %v1355_v58 = vadd.f32 %v3749_v56, %v1354_v43 }
 0x347   : > { %v1160_v15 = vpop.f32.mrf.mxu3 }
 0x348   : > { %1393 = vmatmul.bf16.gmra.mxu0 %v1255_v7  ;;  %1619 = vmatmul.bf16.gmra.mxu1 %v1517_v39  ;;  %v1425_v26 = vadd.f32 %v1355_v58, %v3597_v0  ;;  %v1161_v33 = vadd.f32 %v3661_v57, %v1160_v15 }
 0x34a   : > { %v1457_v31 = vmul.f32 0.1, %v1425_v26  ;;  %v1204_v5 = vmul.f32 0.1, %v1161_v33 }
 0x34c   : > { %v3793_v17 = vmax.f32 %v1425_v26, %v1457_v31  ;;  %v1236_v18 = vmax.f32 %v1161_v33, %v1204_v5 }
 0x34d   : > { %v1356_v40 = vpop.f32.mrf.mxu0 }
 0x34e   : > { %v1357_v45 = vadd.f32 %v3749_v56, %v1356_v40 }
 0x34f   : > { %v1162_v3 = vpop.f32.mrf.mxu3 }
 0x350   : > { %v1426_v11 = vadd.f32 %v1357_v45, %v3599_v1  ;;  %v1163_v51 = vadd.f32 %v3661_v57, %v1162_v3 }
 0x352   : > { %v1458_v46 = vmul.f32 0.1, %v1426_v11  ;;  %v1205_v55 = vmul.f32 0.1, %v1163_v51 }
 0x354   : > { %v3795_v0 = vmax.f32 %v1426_v11, %v1458_v46  ;;  %v1237_v19 = vmax.f32 %v1163_v51, %v1205_v55  ;;  %v2947_v46 = vld [vmem:[#allocation5 + $0x1e8] sm:$0xff] }
 0x355   : > { %v1359_v28 = vpop.f32.mrf.mxu0  ;;  %2113 = vmatpush.bf16.msra.mxu3 %v2947_v46 }
 0x356   : > { %v1256_v23 = vpack.c.bf16 %v1237_v19, %v1236_v18  ;;  %v1518_v42 = vpack.c.bf16 %v3795_v0, %v3793_v17  ;;  %v1360_v24 = vadd.f32 %v3749_v56, %v1359_v28 }
 0x357   : > { %v1165_v12 = vpop.f32.mrf.mxu3 }
 0x358   : > { %1398 = vmatmul.bf16.gmra.mxu0 %v1256_v23  ;;  %1624 = vmatmul.bf16.gmra.mxu1 %v1518_v42  ;;  %v1427_v1 = vadd.f32 %v1360_v24, %v3609_v44  ;;  %v1166_v62 = vadd.f32 %v3661_v57, %v1165_v12 }
 0x35a   : > { %v1459_v43 = vmul.f32 0.1, %v1427_v1  ;;  %v1206_v7 = vmul.f32 0.1, %v1166_v62 }
 0x35c   : > { %v3805_v33 = vmax.f32 %v1427_v1, %v1459_v43  ;;  %v1238_v8 = vmax.f32 %v1166_v62, %v1206_v7 }
 0x35d   : > { %v1361_v9 = vpop.f32.mrf.mxu0 }
 0x35e   : > { %v1362_v13 = vadd.f32 %v3749_v56, %v1361_v9 }
 0x35f   : > { %v1167_v38 = vpop.f32.mrf.mxu3 }
 0x360   : > { %v1428_v39 = vadd.f32 %v1362_v13, %v3611_v47  ;;  %v1168_v15 = vadd.f32 %v3661_v57, %v1167_v38 }
 0x362   : > { %v1460_v58 = vmul.f32 0.1, %v1428_v39  ;;  %v1207_v26 = vmul.f32 0.1, %v1168_v15 }
 0x364   : > { %v3807_v44 = vmax.f32 %v1428_v39, %v1460_v58  ;;  %v1239_v40 = vmax.f32 %v1168_v15, %v1207_v26  ;;  %v2934_v58 = vld [vmem:[#allocation5 + $0x180] sm:$0xff] }
 0x365   : > { %v1364_v45 = vpop.f32.mrf.mxu0  ;;  %1847 = vmatpush.bf16.msra.mxu2 %v2934_v58 }
 0x366   : > { %v1257_v3 = vpack.c.bf16 %v1239_v40, %v1238_v8  ;;  %v1519_v31 = vpack.c.bf16 %v3807_v44, %v3805_v33  ;;  %v1365_v11 = vadd.f32 %v3749_v56, %v1364_v45 }
 0x367   : > { %v1170_v5 = vpop.f32.mrf.mxu3 }
 0x368   : > { %1403 = vmatmul.bf16.gmra.mxu0 %v1257_v3  ;;  %1629 = vmatmul.bf16.gmra.mxu1 %v1519_v31  ;;  %v1429_v47 = vadd.f32 %v1365_v11, %v3621_v27  ;;  %v1171_v51 = vadd.f32 %v3661_v57, %v1170_v5 }
 0x36a   : > { %v1461_v28 = vmul.f32 0.1, %v1429_v47  ;;  %v1208_v23 = vmul.f32 0.1, %v1171_v51 }
 0x36c   : > { %v3817_v62 = vmax.f32 %v1429_v47, %v1461_v28  ;;  %v1240_v36 = vmax.f32 %v1171_v51, %v1208_v23 }
 0x36d   : > { %v1366_v55 = vpop.f32.mrf.mxu0 }
 0x36e   : > { %v1367_v18 = vadd.f32 %v3749_v56, %v1366_v55 }
 0x36f   : > { %v1172_v19 = vpop.f32.mrf.mxu3 }
 0x370   : > { %v1430_v42 = vadd.f32 %v1367_v18, %v3623_v61  ;;  %v1173_v12 = vadd.f32 %v3661_v57, %v1172_v19 }
 0x372   : > { %v1462_v24 = vmul.f32 0.1, %v1430_v42  ;;  %v1209_v1 = vmul.f32 0.1, %v1173_v12 }
 0x374   : > { %v3819_v27 = vmax.f32 %v1430_v42, %v1462_v24  ;;  %v1241_v9 = vmax.f32 %v1173_v12, %v1209_v1 }
 0x375   : > { %v1369_v13 = vpop.f32.mrf.mxu0 }
 0x376   : > { %v1258_v38 = vpack.c.bf16 %v1241_v9, %v1240_v36  ;;  %v1520_v43 = vpack.c.bf16 %v3819_v27, %v3817_v62  ;;  %v1370_v39 = vadd.f32 %v3749_v56, %v1369_v13 }
 0x377   : > { %v1175_v7 = vpop.f32.mrf.mxu3 }
 0x378   : > { %1408 = vmatmul.bf16.gmra.mxu0 %v1258_v38  ;;  %1634 = vmatmul.bf16.gmra.mxu1 %v1520_v43  ;;  %v1431_v61 = vadd.f32 %v1370_v39, %v3633_v63  ;;  %v1176_v15 = vadd.f32 %v3661_v57, %v1175_v7 }
 0x37a   : > { %v1463_v45 = vmul.f32 0.1, %v1431_v61  ;;  %v1210_v3 = vmul.f32 0.1, %v1176_v15 }
 0x37c   : > { %v3829_v51 = vmax.f32 %v1431_v61, %v1463_v45  ;;  %v1242_v46 = vmax.f32 %v1176_v15, %v1210_v3  ;;  %v3853_v3 = vld [vmem:[#allocation7 + $0x5] ss:$0 sm:$0xff] }
 0x37d   : > { %v1371_v26 = vpop.f32.mrf.mxu0 }
 0x37e   : > { %v1372_v8 = vadd.f32 %v3749_v56, %v1371_v26 }
 0x37f   : > { %v1177_v40 = vpop.f32.mrf.mxu3 }
 0x380   : > { %v1432_v31 = vadd.f32 %v1372_v8, %v3635_v34  ;;  %v1178_v5 = vadd.f32 %v3661_v57, %v1177_v40  ;;  %v2946_v57 = vld [vmem:[#allocation5 + $0x1e0] sm:$0xff] }
 0x381   : > { %2114 = vmatpush.bf16.msra.mxu3 %v2946_v57 }
 0x382   : > { %v1464_v11 = vmul.f32 0.1, %v1432_v31  ;;  %v1211_v47 = vmul.f32 0.1, %v1178_v5 }
 0x384   : > { %v3831_v63 = vmax.f32 %v1432_v31, %v1464_v11  ;;  %v1243_v55 = vmax.f32 %v1178_v5, %v1211_v47 }
 0x385   : > { %v1374_v18 = vpop.f32.mrf.mxu0 }
 0x386   : > { %v1259_v19 = vpack.c.bf16 %v1243_v55, %v1242_v46  ;;  %v1521_v28 = vpack.c.bf16 %v3831_v63, %v3829_v51  ;;  %v1375_v23 = vadd.f32 %v3749_v56, %v1374_v18 }
 0x388   : > { %1413 = vmatmul.bf16.gmra.mxu0 %v1259_v19  ;;  %1639 = vmatmul.bf16.gmra.mxu1 %v1521_v28  ;;  %v1433_v34 = vadd.f32 %v1375_v23, %v3643_v60 }
 0x38a   : > { %v1465_v24 = vmul.f32 0.1, %v1433_v34 }
 0x38c   : > { %v3839_v9 = vmax.f32 %v1433_v34, %v1465_v24 }
 0x38d   : > { %v1376_v42 = vpop.f32.mrf.mxu0 }
 0x38e   : > { %v1377_v12 = vadd.f32 %v3749_v56, %v1376_v42 }
 0x390   : > { %v1434_v1 = vadd.f32 %v1377_v12, %v3645_v20 }
 0x392   : > { %v1466_v36 = vmul.f32 0.1, %v1434_v1 }
 0x394   : > { %v3841_v13 = vmax.f32 %v1434_v1, %v1466_v36 }
 0x395   : > { %v1379_v38 = vpop.f32.mrf.mxu0 }
 0x396   : > { %v1522_v43 = vpack.c.bf16 %v3841_v13, %v3839_v9  ;;  %v1380_v7 = vadd.f32 %v3749_v56, %v1379_v38 }
 0x398   : > { %1644 = vmatmul.bf16.gmra.mxu1 %v1522_v43  ;;  %v1435_v60 = vadd.f32 %v1380_v7, %v3653_v48 }
 0x39a   : > { %v1467_v15 = vmul.f32 0.1, %v1435_v60 }
 0x39c   : > { %v3849_v26 = vmax.f32 %v1435_v60, %v1467_v15 }
 0x39d   : > { %v1381_v39 = vpop.f32.mrf.mxu0 }
 0x39e   : > { %v1382_v61 = vadd.f32 %v3749_v56, %v1381_v39 }
 0x3a0   : > { %v1436_v20 = vadd.f32 %v1382_v61, %v3655_v50  ;;  %v2945_v50 = vld [vmem:[#allocation5 + $0x1d8] sm:$0xff] }
 0x3a1   : > { %2115 = vmatpush.bf16.msra.mxu3 %v2945_v50 }
 0x3a2   : > { %v1468_v58 = vmul.f32 0.1, %v1436_v20 }
 0x3a4   : > { %v3851_v8 = vmax.f32 %v1436_v20, %v1468_v58 }
 0x3a5   : > { %v1384_v40 = vpop.f32.mrf.mxu0  ;;  %v1610_v45 = vpop.f32.mrf.mxu1 }
 0x3a6   : > { %v1523_v31 = vpack.c.bf16 %v3851_v8, %v3849_v26  ;;  %v1385_v48 = vadd.f32 %v3749_v56, %v1384_v40  ;;  %v1611_v5 = vadd.f32 %v3853_v3, %v1610_v45 }
 0x3a8   : > { %1649 = vmatmul.bf16.gmra.mxu1 %v1523_v31  ;;  %v1437_v11 = vadd.f32 %v1385_v48, %v3666_v59  ;;  %v1690_v55 = vmul.f32 0.1, %v1611_v5 }
 0x3aa   : > { %v1469_v28 = vmul.f32 0.1, %v1437_v11  ;;  %v1722_v57 = vmax.f32 %v1611_v5, %v1690_v55 }
 0x3ac   : > { %v3863_v24 = vmax.f32 %v1437_v11, %v1469_v28 }
 0x3ad   : > { %v1386_v47 = vpop.f32.mrf.mxu0  ;;  %v1612_v46 = vpop.f32.mrf.mxu1 }
 0x3ae   : > { %v1387_v18 = vadd.f32 %v3749_v56, %v1386_v47  ;;  %v1613_v19 = vadd.f32 %v3853_v3, %v1612_v46 }
 0x3b0   : > { %v1438_v23 = vadd.f32 %v1387_v18, %v3668_v35  ;;  %v1691_v34 = vmul.f32 0.1, %v1613_v19 }
 0x3b2   : > { %v1470_v42 = vmul.f32 0.1, %v1438_v23  ;;  %v1723_v12 = vmax.f32 %v1613_v19, %v1691_v34  ;;  %v2944_v34 = vld [vmem:[#allocation5 + $0x1d0] sm:$0xff] }
 0x3b3   : > { %2116 = vmatpush.bf16.msra.mxu3 %v2944_v34 }
 0x3b4   : > { %v3865_v1 = vmax.f32 %v1438_v23, %v1470_v42  ;;  %v1754_v59 = vpack.c.bf16 %v1723_v12, %v1722_v57 }
 0x3b5   : > { %v1389_v36 = vpop.f32.mrf.mxu0  ;;  %v1615_v38 = vpop.f32.mrf.mxu1 }
 0x3b6   : > { %1848 = vmatmul.bf16.vlgmr.msra.gmra.mxu2 %v1754_v59  ;;  %v1524_v43 = vpack.c.bf16 %v3865_v1, %v3863_v24  ;;  %v1390_v7 = vadd.f32 %v3749_v56, %v1389_v36  ;;  %v1616_v35 = vadd.f32 %v3853_v3, %v1615_v38 }
 0x3b8   : > { %1654 = vmatmul.bf16.gmra.mxu1 %v1524_v43  ;;  %v1439_v60 = vadd.f32 %v1390_v7, %v3678_v49  ;;  %v1692_v15 = vmul.f32 0.1, %v1616_v35  ;;  %v2957_v49 = vld [vmem:[#allocation5 + $0x238] sm:$0xff] }
 0x3b9   : > { %2350 = vmatpush.bf16.msra.mxu0 %v2957_v49 }
 0x3ba   : > { %v1471_v40 = vmul.f32 0.1, %v1439_v60  ;;  %v1724_v48 = vmax.f32 %v1616_v35, %v1692_v15 }
 0x3bc   : > { %v3875_v50 = vmax.f32 %v1439_v60, %v1471_v40 }
 0x3bd   : > { %v1391_v39 = vpop.f32.mrf.mxu0  ;;  %v1617_v61 = vpop.f32.mrf.mxu1 }
 0x3be   : > { %v1392_v20 = vadd.f32 %v3749_v56, %v1391_v39  ;;  %v1618_v58 = vadd.f32 %v3853_v3, %v1617_v61 }
 0x3c0   : > { %v1440_v45 = vadd.f32 %v1392_v20, %v3680_v32  ;;  %v1693_v31 = vmul.f32 0.1, %v1618_v58 }
 0x3c2   : > { %v1472_v5 = vmul.f32 0.1, %v1440_v45  ;;  %v1725_v11 = vmax.f32 %v1618_v58, %v1693_v31 }
 0x3c4   : > { %v3877_v47 = vmax.f32 %v1440_v45, %v1472_v5  ;;  %v1755_v46 = vpack.c.bf16 %v1725_v11, %v1724_v48 }
 0x3c5   : > { %v1394_v55 = vpop.f32.mrf.mxu0  ;;  %v1620_v18 = vpop.f32.mrf.mxu1 }
 0x3c6   : > { %1853 = vmatmul.bf16.gmra.mxu2 %v1755_v46  ;;  %v1525_v19 = vpack.c.bf16 %v3877_v47, %v3875_v50  ;;  %v1395_v28 = vadd.f32 %v3749_v56, %v1394_v55  ;;  %v1621_v32 = vadd.f32 %v3853_v3, %v1620_v18 }
 0x3c8   : > { %1659 = vmatmul.bf16.gmra.mxu1 %v1525_v19  ;;  %v1441_v23 = vadd.f32 %v1395_v28, %v3690_v29  ;;  %v1694_v12 = vmul.f32 0.1, %v1621_v32 }
 0x3ca   : > { %v1473_v38 = vmul.f32 0.1, %v1441_v23  ;;  %v1726_v35 = vmax.f32 %v1621_v32, %v1694_v12 }
 0x3cc   : > { %v3887_v61 = vmax.f32 %v1441_v23, %v1473_v38 }
 0x3cd   : > { %v1396_v57 = vpop.f32.mrf.mxu0  ;;  %v1622_v42 = vpop.f32.mrf.mxu1 }
 0x3ce   : > { %v1397_v59 = vadd.f32 %v3749_v56, %v1396_v57  ;;  %v1623_v36 = vadd.f32 %v3853_v3, %v1622_v42 }
 0x3d0   : > { %v1442_v43 = vadd.f32 %v1397_v59, %v3692_v30  ;;  %v1695_v7 = vmul.f32 0.1, %v1623_v36 }
 0x3d2   : > { %v1474_v60 = vmul.f32 0.1, %v1442_v43  ;;  %v1727_v39 = vmax.f32 %v1623_v36, %v1695_v7  ;;  %v2943_v7 = vld [vmem:[#allocation5 + $0x1c8] sm:$0xff] }
 0x3d3   : > { %2117 = vmatpush.bf16.msra.mxu3 %v2943_v7  ;;  %v2955_v7 = vld [vmem:[#allocation5 + $0x228] sm:$0xff] }
 0x3d4   : > { %v3889_v15 = vmax.f32 %v1442_v43, %v1474_v60  ;;  %v1756_v29 = vpack.c.bf16 %v1727_v39, %v1726_v35 }
 0x3d5   : > { %v1399_v20 = vpop.f32.mrf.mxu0  ;;  %v1625_v58 = vpop.f32.mrf.mxu1 }
 0x3d6   : > { %1858 = vmatmul.bf16.gmra.mxu2 %v1756_v29  ;;  %v1526_v40 = vpack.c.bf16 %v3889_v15, %v3887_v61  ;;  %v1400_v45 = vadd.f32 %v3749_v56, %v1399_v20  ;;  %v1626_v30 = vadd.f32 %v3853_v3, %v1625_v58 }
 0x3d8   : > { %1664 = vmatmul.bf16.gmra.mxu1 %v1526_v40  ;;  %v1443_v31 = vadd.f32 %v1400_v45, %v3702_v16  ;;  %v1696_v11 = vmul.f32 0.1, %v1626_v30  ;;  %v2956_v16 = vld [vmem:[#allocation5 + $0x230] sm:$0xff] }
 0x3d9   : > { %2351 = vmatpush.bf16.msra.mxu0 %v2956_v16 }
 0x3da   : > { %v1475_v55 = vmul.f32 0.1, %v1443_v31  ;;  %v1728_v28 = vmax.f32 %v1626_v30, %v1696_v11 }
 0x3dc   : > { %v3899_v34 = vmax.f32 %v1443_v31, %v1475_v55 }
 0x3dd   : > { %v1401_v48 = vpop.f32.mrf.mxu0  ;;  %v1627_v5 = vpop.f32.mrf.mxu1  ;;  %2352 = vmatpush.bf16.msra.mxu0 %v2955_v7 }
 0x3de   : > { %v1402_v46 = vadd.f32 %v3749_v56, %v1401_v48  ;;  %v1628_v49 = vadd.f32 %v3853_v3, %v1627_v5 }
 0x3e0   : > { %v1444_v18 = vadd.f32 %v1402_v46, %v3704_v14  ;;  %v1697_v19 = vmul.f32 0.1, %v1628_v49 }
 0x3e2   : > { %v1476_v32 = vmul.f32 0.1, %v1444_v18  ;;  %v1729_v23 = vmax.f32 %v1628_v49, %v1697_v19 }
 0x3e4   : > { %v3901_v57 = vmax.f32 %v1444_v18, %v1476_v32  ;;  %v1757_v42 = vpack.c.bf16 %v1729_v23, %v1728_v28 }
 0x3e5   : > { %v1404_v12 = vpop.f32.mrf.mxu0  ;;  %v1630_v59 = vpop.f32.mrf.mxu1 }
 0x3e6   : > { %1863 = vmatmul.bf16.gmra.mxu2 %v1757_v42  ;;  %v1527_v36 = vpack.c.bf16 %v3901_v57, %v3899_v34  ;;  %v1405_v38 = vadd.f32 %v3749_v56, %v1404_v12  ;;  %v1631_v14 = vadd.f32 %v3853_v3, %v1630_v59 }
 0x3e8   : > { %1669 = vmatmul.bf16.gmra.mxu1 %v1527_v36  ;;  %v1445_v43 = vadd.f32 %v1405_v38, %v3714_v41  ;;  %v1698_v39 = vmul.f32 0.1, %v1631_v14 }
 0x3ea   : > { %v1477_v58 = vmul.f32 0.1, %v1445_v43  ;;  %v1730_v30 = vmax.f32 %v1631_v14, %v1698_v39 }
 0x3ec   : > { %v3911_v5 = vmax.f32 %v1445_v43, %v1477_v58 }
 0x3ed   : > { %v1406_v35 = vpop.f32.mrf.mxu0  ;;  %v1632_v60 = vpop.f32.mrf.mxu1 }
 0x3ee   : > { %v1407_v29 = vadd.f32 %v3749_v56, %v1406_v35  ;;  %v1633_v20 = vadd.f32 %v3853_v3, %v1632_v60 }
 0x3f0   : > { %v1446_v40 = vadd.f32 %v1407_v29, %v3716_v52  ;;  %v1699_v45 = vmul.f32 0.1, %v1633_v20 }
 0x3f2   : > { %v1478_v31 = vmul.f32 0.1, %v1446_v40  ;;  %v1731_v48 = vmax.f32 %v1633_v20, %v1699_v45 }
 0x3f4   : > { %v3913_v11 = vmax.f32 %v1446_v40, %v1478_v31  ;;  %v1758_v41 = vpack.c.bf16 %v1731_v48, %v1730_v30  ;;  %v2942_v40 = vld [vmem:[#allocation5 + $0x1c0] sm:$0xff] }
 0x3f5   : > { %v1409_v46 = vpop.f32.mrf.mxu0  ;;  %v1635_v49 = vpop.f32.mrf.mxu1  ;;  %2118 = vmatpush.bf16.msra.mxu3 %v2942_v40 }
 0x3f6   : > { %1868 = vmatmul.bf16.gmra.mxu2 %v1758_v41  ;;  %v1528_v55 = vpack.c.bf16 %v3913_v11, %v3911_v5  ;;  %v1410_v18 = vadd.f32 %v3749_v56, %v1409_v46  ;;  %v1636_v52 = vadd.f32 %v3853_v3, %v1635_v49 }
 0x3f8   : > { %1674 = vmatmul.bf16.gmra.mxu1 %v1528_v55  ;;  %v1447_v19 = vadd.f32 %v1410_v18, %v3726_v6  ;;  %v1700_v23 = vmul.f32 0.1, %v1636_v52 }
 0x3fa   : > { %v1479_v12 = vmul.f32 0.1, %v1447_v19  ;;  %v1732_v38 = vmax.f32 %v1636_v52, %v1700_v23 }
 0x3fc   : > { %v3923_v35 = vmax.f32 %v1447_v19, %v1479_v12 }
 0x3fd   : > { %v1411_v28 = vpop.f32.mrf.mxu0  ;;  %v1637_v32 = vpop.f32.mrf.mxu1 }
 0x3fe   : > { %v1412_v42 = vadd.f32 %v3749_v56, %v1411_v28  ;;  %v1638_v16 = vadd.f32 %v3853_v3, %v1637_v32 }
 0x400   : > { %v1448_v59 = vadd.f32 %v1412_v42, %v3728_v53  ;;  %v1701_v36 = vmul.f32 0.1, %v1638_v16 }
 0x402   : > { %v1480_v14 = vmul.f32 0.1, %v1448_v59  ;;  %v1733_v43 = vmax.f32 %v1638_v16, %v1701_v36 }
 0x404   : > { %v3925_v60 = vmax.f32 %v1448_v59, %v1480_v14  ;;  %v1759_v6 = vpack.c.bf16 %v1733_v43, %v1732_v38  ;;  %v2954_v43 = vld [vmem:[#allocation5 + $0x220] sm:$0xff] }
 0x405   : > { %v1414_v39 = vpop.f32.mrf.mxu0  ;;  %v1640_v29 = vpop.f32.mrf.mxu1  ;;  %2353 = vmatpush.bf16.msra.mxu0 %v2954_v43 }
 0x406   : > { %1873 = vmatmul.bf16.gmra.mxu2 %v1759_v6  ;;  %v1529_v20 = vpack.c.bf16 %v3925_v60, %v3923_v35  ;;  %v1415_v58 = vadd.f32 %v3749_v56, %v1414_v39  ;;  %v1641_v53 = vadd.f32 %v3853_v3, %v1640_v29 }
 0x408   : > { %1679 = vmatmul.bf16.gmra.mxu1 %v1529_v20  ;;  %v1449_v45 = vadd.f32 %v1415_v58, %v3738_v37  ;;  %v1702_v48 = vmul.f32 0.1, %v1641_v53 }
 0x40a   : > { %v1481_v49 = vmul.f32 0.1, %v1449_v45  ;;  %v1734_v52 = vmax.f32 %v1641_v53, %v1702_v48  ;;  %v3945_v48 = vld [vmem:[#allocation7 + $0x6] ss:$0 sm:$0xff] }
 0x40c   : > { %v3935_v32 = vmax.f32 %v1449_v45, %v1481_v49 }
 0x40d   : > { %v1416_v30 = vpop.f32.mrf.mxu0  ;;  %v1642_v31 = vpop.f32.mrf.mxu1 }
 0x40e   : > { %v1417_v41 = vadd.f32 %v3749_v56, %v1416_v30  ;;  %v1643_v46 = vadd.f32 %v3853_v3, %v1642_v31 }
 0x410   : > { %v1450_v55 = vadd.f32 %v1417_v41, %v3740_v2  ;;  %v1703_v18 = vmul.f32 0.1, %v1643_v46 }
 0x412   : > { %v1482_v19 = vmul.f32 0.1, %v1450_v55  ;;  %v1735_v28 = vmax.f32 %v1643_v46, %v1703_v18 }
 0x414   : > { %v3937_v23 = vmax.f32 %v1450_v55, %v1482_v19  ;;  %v1760_v37 = vpack.c.bf16 %v1735_v28, %v1734_v52 }
 0x415   : > { %v1645_v42 = vpop.f32.mrf.mxu1 }
 0x416   : > { %1878 = vmatmul.bf16.gmra.mxu2 %v1760_v37  ;;  %v1530_v16 = vpack.c.bf16 %v3937_v23, %v3935_v32  ;;  %v1646_v56 = vadd.f32 %v3853_v3, %v1645_v42 }
 0x418   : > { %1684 = vmatmul.bf16.gmra.mxu1 %v1530_v16  ;;  %v1704_v59 = vmul.f32 0.1, %v1646_v56 }
 0x41a   : > { %v1736_v38 = vmax.f32 %v1646_v56, %v1704_v59 }
 0x41d   : > { %v1647_v12 = vpop.f32.mrf.mxu1 }
 0x41e   : > { %v1648_v2 = vadd.f32 %v3853_v3, %v1647_v12  ;;  %v2953_v12 = vld [vmem:[#allocation5 + $0x218] sm:$0xff] }
 0x41f   : > { %2354 = vmatpush.bf16.msra.mxu0 %v2953_v12 }
 0x420   : > { %v1705_v36 = vmul.f32 0.1, %v1648_v2 }
 0x422   : > { %v1737_v14 = vmax.f32 %v1648_v2, %v1705_v36 }
 0x424   : > { %v1761_v7 = vpack.c.bf16 %v1737_v14, %v1736_v38 }
 0x425   : > { %v1650_v6 = vpop.f32.mrf.mxu1 }
 0x426   : > { %1883 = vmatmul.bf16.gmra.mxu2 %v1761_v7  ;;  %v1651_v39 = vadd.f32 %v3853_v3, %v1650_v6 }
 0x428   : > { %v1706_v20 = vmul.f32 0.1, %v1651_v39 }
 0x42a   : > { %v1738_v40 = vmax.f32 %v1651_v39, %v1706_v20 }
 0x42d   : > { %v1652_v29 = vpop.f32.mrf.mxu1 }
 0x42e   : > { %v1653_v58 = vadd.f32 %v3853_v3, %v1652_v29 }
 0x430   : > { %v1707_v53 = vmul.f32 0.1, %v1653_v58 }
 0x432   : > { %v1739_v45 = vmax.f32 %v1653_v58, %v1707_v53 }
 0x434   : > { %v1762_v30 = vpack.c.bf16 %v1739_v45, %v1738_v40 }
 0x435   : > { %v1655_v31 = vpop.f32.mrf.mxu1 }
 0x436   : > { %1888 = vmatmul.bf16.gmra.mxu2 %v1762_v30  ;;  %v1656_v46 = vadd.f32 %v3853_v3, %v1655_v31 }
 0x438   : > { %v1708_v18 = vmul.f32 0.1, %v1656_v46 }
 0x439   : > { %v1849_v41 = vpop.f32.mrf.mxu2 }
 0x43a   : > { %v1850_v49 = vadd.f32 %v3945_v48, %v1849_v41  ;;  %v1740_v42 = vmax.f32 %v1656_v46, %v1708_v18 }
 0x43c   : > { %v1929_v19 = vadd.f32 %v1850_v49, %v3757_v22 }
 0x43d   : > { %v1657_v55 = vpop.f32.mrf.mxu1 }
 0x43e   : > { %v1658_v52 = vadd.f32 %v3853_v3, %v1657_v55  ;;  %v1961_v59 = vmul.f32 0.1, %v1929_v19 }
 0x440   : > { %v1709_v28 = vmul.f32 0.1, %v1658_v52  ;;  %v1993_v43 = vmax.f32 %v1929_v19, %v1961_v59 }
 0x441   : > { %v1851_v37 = vpop.f32.mrf.mxu2 }
 0x442   : > { %v1741_v16 = vmax.f32 %v1658_v52, %v1709_v28  ;;  %v1852_v56 = vadd.f32 %v3945_v48, %v1851_v37 }
 0x444   : > { %v1930_v2 = vadd.f32 %v1852_v56, %v3759_v4  ;;  %v1763_v36 = vpack.c.bf16 %v1741_v16, %v1740_v42 }
 0x445   : > { %v1660_v38 = vpop.f32.mrf.mxu1 }
 0x446   : > { %v1962_v14 = vmul.f32 0.1, %v1930_v2  ;;  %1893 = vmatmul.bf16.gmra.mxu2 %v1763_v36  ;;  %v1661_v22 = vadd.f32 %v3853_v3, %v1660_v38 }
 0x448   : > { %v1994_v7 = vmax.f32 %v1930_v2, %v1962_v14  ;;  %v1710_v58 = vmul.f32 0.1, %v1661_v22 }
 0x449   : > { %v1854_v6 = vpop.f32.mrf.mxu2 }
 0x44a   : > { %v2025_v39 = vpack.c.bf16 %v1994_v7, %v1993_v43  ;;  %v1855_v29 = vadd.f32 %v3945_v48, %v1854_v6  ;;  %v1742_v30 = vmax.f32 %v1661_v22, %v1710_v58  ;;  %v2952_v7 = vld [vmem:[#allocation5 + $0x210] sm:$0xff] }
 0x44b   : > { %2355 = vmatpush.bf16.msra.mxu0 %v2952_v7 }
 0x44c   : > { %2119 = vmatmul.bf16.vlgmr.msra.gmra.mxu3 %v2025_v39  ;;  %v1931_v4 = vadd.f32 %v1855_v29, %v3769_v10 }
 0x44d   : > { %v1662_v20 = vpop.f32.mrf.mxu1 }
 0x44e   : > { %v1663_v53 = vadd.f32 %v3853_v3, %v1662_v20  ;;  %v1963_v46 = vmul.f32 0.1, %v1931_v4 }
 0x450   : > { %v1711_v40 = vmul.f32 0.1, %v1663_v53  ;;  %v1995_v19 = vmax.f32 %v1931_v4, %v1963_v46 }
 0x451   : > { %v1856_v45 = vpop.f32.mrf.mxu2 }
 0x452   : > { %v1743_v31 = vmax.f32 %v1663_v53, %v1711_v40  ;;  %v1857_v41 = vadd.f32 %v3945_v48, %v1856_v45 }
 0x454   : > { %v1932_v49 = vadd.f32 %v1857_v41, %v3771_v54  ;;  %v1764_v55 = vpack.c.bf16 %v1743_v31, %v1742_v30 }
 0x455   : > { %v1665_v18 = vpop.f32.mrf.mxu1 }
 0x456   : > { %v1964_v52 = vmul.f32 0.1, %v1932_v49  ;;  %1898 = vmatmul.bf16.gmra.mxu2 %v1764_v55  ;;  %v1666_v42 = vadd.f32 %v3853_v3, %v1665_v18 }
 0x458   : > { %v1996_v28 = vmax.f32 %v1932_v49, %v1964_v52  ;;  %v1712_v12 = vmul.f32 0.1, %v1666_v42 }
 0x459   : > { %v1859_v37 = vpop.f32.mrf.mxu2 }
 0x45a   : > { %v2026_v16 = vpack.c.bf16 %v1996_v28, %v1995_v19  ;;  %v1860_v10 = vadd.f32 %v3945_v48, %v1859_v37  ;;  %v1744_v38 = vmax.f32 %v1666_v42, %v1712_v12 }
 0x45c   : > { %2124 = vmatmul.bf16.gmra.mxu3 %v2026_v16  ;;  %v1933_v2 = vadd.f32 %v1860_v10, %v3781_v21 }
 0x45d   : > { %v1667_v56 = vpop.f32.mrf.mxu1 }
 0x45e   : > { %v1668_v59 = vadd.f32 %v3853_v3, %v1667_v56  ;;  %v1965_v6 = vmul.f32 0.1, %v1933_v2 }
 0x460   : > { %v1713_v54 = vmul.f32 0.1, %v1668_v59  ;;  %v1997_v58 = vmax.f32 %v1933_v2, %v1965_v6 }
 0x461   : > { %v1861_v36 = vpop.f32.mrf.mxu2 }
 0x462   : > { %v1745_v14 = vmax.f32 %v1668_v59, %v1713_v54  ;;  %v1862_v43 = vadd.f32 %v3945_v48, %v1861_v36 }
 0x464   : > { %v1934_v39 = vadd.f32 %v1862_v43, %v3783_v25  ;;  %v1765_v22 = vpack.c.bf16 %v1745_v14, %v1744_v38 }
 0x465   : > { %v1670_v29 = vpop.f32.mrf.mxu1 }
 0x466   : > { %v1966_v20 = vmul.f32 0.1, %v1934_v39  ;;  %1903 = vmatmul.bf16.gmra.mxu2 %v1765_v22  ;;  %v1671_v21 = vadd.f32 %v3853_v3, %v1670_v29  ;;  %v2951_v22 = vld [vmem:[#allocation5 + $0x208] sm:$0xff] }
 0x467   : > { %2356 = vmatpush.bf16.msra.mxu0 %v2951_v22 }
 0x468   : > { %v1998_v53 = vmax.f32 %v1934_v39, %v1966_v20  ;;  %v1714_v31 = vmul.f32 0.1, %v1671_v21 }
 0x469   : > { %v1864_v4 = vpop.f32.mrf.mxu2 }
 0x46a   : > { %v2027_v40 = vpack.c.bf16 %v1998_v53, %v1997_v58  ;;  %v1865_v45 = vadd.f32 %v3945_v48, %v1864_v4  ;;  %v1746_v55 = vmax.f32 %v1671_v21, %v1714_v31 }
 0x46c   : > { %2129 = vmatmul.bf16.gmra.mxu3 %v2027_v40  ;;  %v1935_v25 = vadd.f32 %v1865_v45, %v3793_v17 }
 0x46d   : > { %v1672_v30 = vpop.f32.mrf.mxu1 }
 0x46e   : > { %v1673_v41 = vadd.f32 %v3853_v3, %v1672_v30  ;;  %v1967_v19 = vmul.f32 0.1, %v1935_v25 }
 0x470   : > { %v1715_v46 = vmul.f32 0.1, %v1673_v41  ;;  %v1999_v10 = vmax.f32 %v1935_v25, %v1967_v19 }
 0x471   : > { %v1866_v49 = vpop.f32.mrf.mxu2 }
 0x472   : > { %v1747_v18 = vmax.f32 %v1673_v41, %v1715_v46  ;;  %v1867_v52 = vadd.f32 %v3945_v48, %v1866_v49 }
 0x474   : > { %v1936_v28 = vadd.f32 %v1867_v52, %v3795_v0  ;;  %v1766_v37 = vpack.c.bf16 %v1747_v18, %v1746_v55 }
 0x475   : > { %v1675_v42 = vpop.f32.mrf.mxu1 }
 0x476   : > { %v1968_v16 = vmul.f32 0.1, %v1936_v28  ;;  %1908 = vmatmul.bf16.gmra.mxu2 %v1766_v37  ;;  %v1676_v59 = vadd.f32 %v3853_v3, %v1675_v42 }
 0x478   : > { %v2000_v56 = vmax.f32 %v1936_v28, %v1968_v16  ;;  %v1716_v36 = vmul.f32 0.1, %v1676_v59 }
 0x479   : > { %v1869_v12 = vpop.f32.mrf.mxu2 }
 0x47a   : > { %v2028_v2 = vpack.c.bf16 %v2000_v56, %v1999_v10  ;;  %v1870_v17 = vadd.f32 %v3945_v48, %v1869_v12  ;;  %v1748_v7 = vmax.f32 %v1676_v59, %v1716_v36 }
 0x47c   : > { %2134 = vmatmul.bf16.gmra.mxu3 %v2028_v2  ;;  %v1937_v14 = vadd.f32 %v1870_v17, %v3805_v33 }
 0x47d   : > { %v1677_v54 = vpop.f32.mrf.mxu1 }
 0x47e   : > { %v1678_v38 = vadd.f32 %v3853_v3, %v1677_v54  ;;  %v1969_v29 = vmul.f32 0.1, %v1937_v14 }
 0x480   : > { %v1717_v0 = vmul.f32 0.1, %v1678_v38  ;;  %v2001_v21 = vmax.f32 %v1937_v14, %v1969_v29 }
 0x481   : > { %v1871_v43 = vpop.f32.mrf.mxu2 }
 0x482   : > { %v1749_v6 = vmax.f32 %v1678_v38, %v1717_v0  ;;  %v1872_v39 = vadd.f32 %v3945_v48, %v1871_v43  ;;  %v2950_v0 = vld [vmem:[#allocation5 + $0x200] sm:$0xff] }
 0x483   : > { %2357 = vmatpush.bf16.msra.mxu0 %v2950_v0 }
 0x484   : > { %v1938_v20 = vadd.f32 %v1872_v39, %v3807_v44  ;;  %v1767_v58 = vpack.c.bf16 %v1749_v6, %v1748_v7 }
 0x485   : > { %v1680_v53 = vpop.f32.mrf.mxu1 }
 0x486   : > { %v1970_v4 = vmul.f32 0.1, %v1938_v20  ;;  %1913 = vmatmul.bf16.gmra.mxu2 %v1767_v58  ;;  %v1681_v33 = vadd.f32 %v3853_v3, %v1680_v53 }
 0x488   : > { %v2002_v40 = vmax.f32 %v1938_v20, %v1970_v4  ;;  %v1718_v25 = vmul.f32 0.1, %v1681_v33 }
 0x489   : > { %v1874_v45 = vpop.f32.mrf.mxu2 }
 0x48a   : > { %v2029_v30 = vpack.c.bf16 %v2002_v40, %v2001_v21  ;;  %v1875_v31 = vadd.f32 %v3945_v48, %v1874_v45  ;;  %v1750_v18 = vmax.f32 %v1681_v33, %v1718_v25 }
 0x48c   : > { %2139 = vmatmul.bf16.gmra.mxu3 %v2029_v30  ;;  %v1939_v44 = vadd.f32 %v1875_v31, %v3817_v62 }
 0x48d   : > { %v1682_v41 = vpop.f32.mrf.mxu1 }
 0x48e   : > { %v1683_v46 = vadd.f32 %v3853_v3, %v1682_v41  ;;  %v1971_v28 = vmul.f32 0.1, %v1939_v44 }
 0x490   : > { %v1719_v49 = vmul.f32 0.1, %v1683_v46  ;;  %v2003_v56 = vmax.f32 %v1939_v44, %v1971_v28 }
 0x491   : > { %v1876_v55 = vpop.f32.mrf.mxu2 }
 0x492   : > { %v1751_v52 = vmax.f32 %v1683_v46, %v1719_v49  ;;  %v1877_v19 = vadd.f32 %v3945_v48, %v1876_v55 }
 0x494   : > { %v1940_v37 = vadd.f32 %v1877_v19, %v3819_v27  ;;  %v1768_v42 = vpack.c.bf16 %v1751_v52, %v1750_v18 }
 0x495   : > { %v1685_v16 = vpop.f32.mrf.mxu1 }
 0x496   : > { %v1972_v10 = vmul.f32 0.1, %v1940_v37  ;;  %1918 = vmatmul.bf16.gmra.mxu2 %v1768_v42  ;;  %v1686_v2 = vadd.f32 %v3853_v3, %v1685_v16 }
 0x498   : > { %v2004_v12 = vmax.f32 %v1940_v37, %v1972_v10  ;;  %v1720_v36 = vmul.f32 0.1, %v1686_v2 }
 0x499   : > { %v1879_v59 = vpop.f32.mrf.mxu2 }
 0x49a   : > { %v2030_v17 = vpack.c.bf16 %v2004_v12, %v2003_v56  ;;  %v1880_v62 = vadd.f32 %v3945_v48, %v1879_v59  ;;  %v1752_v7 = vmax.f32 %v1686_v2, %v1720_v36  ;;  %v3999_v59 = vld [vmem:[#allocation7 + $0x7] ss:$0 sm:$0xff] }
 0x49c   : > { %2144 = vmatmul.bf16.gmra.mxu3 %v2030_v17  ;;  %v1941_v14 = vadd.f32 %v1880_v62, %v3829_v51 }
 0x49d   : > { %v1687_v54 = vpop.f32.mrf.mxu1 }
 0x49e   : > { %v1688_v38 = vadd.f32 %v3853_v3, %v1687_v54  ;;  %v1973_v22 = vmul.f32 0.1, %v1941_v14 }
 0x4a0   : > { %v1721_v27 = vmul.f32 0.1, %v1688_v38  ;;  %v2005_v53 = vmax.f32 %v1941_v14, %v1973_v22 }
 0x4a1   : > { %v1881_v43 = vpop.f32.mrf.mxu2 }
 0x4a2   : > { %v1753_v6 = vmax.f32 %v1688_v38, %v1721_v27  ;;  %v1882_v39 = vadd.f32 %v3945_v48, %v1881_v43 }
 0x4a4   : > { %v1942_v29 = vadd.f32 %v1882_v39, %v3831_v63  ;;  %v1769_v20 = vpack.c.bf16 %v1753_v6, %v1752_v7 }
 0x4a6   : > { %v1974_v58 = vmul.f32 0.1, %v1942_v29  ;;  %1923 = vmatmul.bf16.gmra.mxu2 %v1769_v20 }
 0x4a8   : > { %v2006_v4 = vmax.f32 %v1942_v29, %v1974_v58 }
 0x4a9   : > { %v1884_v21 = vpop.f32.mrf.mxu2 }
 0x4aa   : > { %v2031_v3 = vpack.c.bf16 %v2006_v4, %v2005_v53  ;;  %v1885_v51 = vadd.f32 %v3945_v48, %v1884_v21 }
 0x4ac   : > { %2149 = vmatmul.bf16.gmra.mxu3 %v2031_v3  ;;  %v1943_v40 = vadd.f32 %v1885_v51, %v3839_v9 }
 0x4ae   : > { %v1975_v30 = vmul.f32 0.1, %v1943_v40 }
 0x4b0   : > { %v2007_v63 = vmax.f32 %v1943_v40, %v1975_v30 }
 0x4b1   : > { %v1886_v45 = vpop.f32.mrf.mxu2 }
 0x4b2   : > { %v1887_v33 = vadd.f32 %v3945_v48, %v1886_v45 }
 0x4b4   : > { %v1944_v31 = vadd.f32 %v1887_v33, %v3841_v13 }
 0x4b6   : > { %v1976_v41 = vmul.f32 0.1, %v1944_v31 }
 0x4b8   : > { %v2008_v25 = vmax.f32 %v1944_v31, %v1976_v41 }
 0x4b9   : > { %v1889_v46 = vpop.f32.mrf.mxu2 }
 0x4ba   : > { %v2032_v44 = vpack.c.bf16 %v2008_v25, %v2007_v63  ;;  %v1890_v49 = vadd.f32 %v3945_v48, %v1889_v46 }
 0x4bc   : > { %2154 = vmatmul.bf16.gmra.mxu3 %v2032_v44  ;;  %v1945_v55 = vadd.f32 %v1890_v49, %v3849_v26 }
 0x4be   : > { %v1977_v9 = vmul.f32 0.1, %v1945_v55 }
 0x4c0   : > { %v2009_v37 = vmax.f32 %v1945_v55, %v1977_v9 }
 0x4c1   : > { %v1891_v18 = vpop.f32.mrf.mxu2 }
 0x4c2   : > { %v1892_v52 = vadd.f32 %v3945_v48, %v1891_v18 }
 0x4c4   : > { %v1946_v19 = vadd.f32 %v1892_v52, %v3851_v8 }
 0x4c6   : > { %v1978_v28 = vmul.f32 0.1, %v1946_v19 }
 0x4c8   : > { %v2010_v42 = vmax.f32 %v1946_v19, %v1978_v28 }
 0x4c9   : > { %v1894_v13 = vpop.f32.mrf.mxu2 }
 0x4ca   : > { %v2033_v16 = vpack.c.bf16 %v2010_v42, %v2009_v37  ;;  %v1895_v10 = vadd.f32 %v3945_v48, %v1894_v13 }
 0x4cc   : > { %2159 = vmatmul.bf16.gmra.mxu3 %v2033_v16  ;;  %v1947_v12 = vadd.f32 %v1895_v10, %v3863_v24 }
 0x4ce   : > { %v1979_v17 = vmul.f32 0.1, %v1947_v12 }
 0x4cf   : > { %v2120_v56 = vpop.f32.mrf.mxu3 }
 0x4d0   : > { %v2121_v62 = vadd.f32 %v3999_v59, %v2120_v56  ;;  %v2011_v38 = vmax.f32 %v1947_v12, %v1979_v17 }
 0x4d1   : > { %v1896_v26 = vpop.f32.mrf.mxu2 }
 0x4d2   : > { %v1897_v2 = vadd.f32 %v3945_v48, %v1896_v26  ;;  %v2200_v14 = vmul.f32 0.1, %v2121_v62 }
 0x4d4   : > { %v1948_v8 = vadd.f32 %v1897_v2, %v3865_v1  ;;  %v2232_v6 = vmax.f32 %v2121_v62, %v2200_v14 }
 0x4d6   : > { %v1980_v54 = vmul.f32 0.1, %v1948_v8 }
 0x4d7   : > { %v2122_v36 = vpop.f32.mrf.mxu3 }
 0x4d8   : > { %v2012_v27 = vmax.f32 %v1948_v8, %v1980_v54  ;;  %v2123_v0 = vadd.f32 %v3999_v59, %v2122_v36 }
 0x4d9   : > { %v1899_v43 = vpop.f32.mrf.mxu2 }
 0x4da   : > { %v2201_v7 = vmul.f32 0.1, %v2123_v0  ;;  %v2034_v24 = vpack.c.bf16 %v2012_v27, %v2011_v38  ;;  %v1900_v22 = vadd.f32 %v3945_v48, %v1899_v43 }
 0x4dc   : > { %v2233_v39 = vmax.f32 %v2123_v0, %v2201_v7  ;;  %2164 = vmatmul.bf16.gmra.mxu3 %v2034_v24  ;;  %v1949_v58 = vadd.f32 %v1900_v22, %v3875_v50 }
 0x4de   : > { %v2264_v29 = vpack.c.bf16 %v2233_v39, %v2232_v6  ;;  %v1981_v4 = vmul.f32 0.1, %v1949_v58 }
 0x4df   : > { %v2125_v20 = vpop.f32.mrf.mxu3 }
 0x4e0   : > { %2358 = vmatmul.bf16.vlgmr.msra.gmra.mxu0 %v2264_v29  ;;  %v2126_v21 = vadd.f32 %v3999_v59, %v2125_v20  ;;  %v2013_v45 = vmax.f32 %v1949_v58, %v1981_v4 }
 0x4e1   : > { %v1901_v1 = vpop.f32.mrf.mxu2 }
 0x4e2   : > { %v1902_v53 = vadd.f32 %v3945_v48, %v1901_v1  ;;  %v2202_v33 = vmul.f32 0.1, %v2126_v21 }
 0x4e4   : > { %v1950_v3 = vadd.f32 %v1902_v53, %v3877_v47  ;;  %v2234_v50 = vmax.f32 %v2126_v21, %v2202_v33 }
 0x4e6   : > { %v1982_v51 = vmul.f32 0.1, %v1950_v3 }
 0x4e7   : > { %v2127_v40 = vpop.f32.mrf.mxu3 }
 0x4e8   : > { %v2014_v30 = vmax.f32 %v1950_v3, %v1982_v51  ;;  %v2128_v31 = vadd.f32 %v3999_v59, %v2127_v40 }
 0x4e9   : > { %v1904_v41 = vpop.f32.mrf.mxu2 }
 0x4ea   : > { %v2203_v63 = vmul.f32 0.1, %v2128_v31  ;;  %v2035_v25 = vpack.c.bf16 %v2014_v30, %v2013_v45  ;;  %v1905_v44 = vadd.f32 %v3945_v48, %v1904_v41 }
 0x4ec   : > { %v2235_v46 = vmax.f32 %v2128_v31, %v2203_v63  ;;  %2169 = vmatmul.bf16.gmra.mxu3 %v2035_v25  ;;  %v1951_v18 = vadd.f32 %v1905_v44, %v3887_v61 }
 0x4ee   : > { %v2265_v49 = vpack.c.bf16 %v2235_v46, %v2234_v50  ;;  %v1983_v9 = vmul.f32 0.1, %v1951_v18 }
 0x4ef   : > { %v2130_v55 = vpop.f32.mrf.mxu3 }
 0x4f0   : > { %2363 = vmatmul.bf16.gmra.mxu0 %v2265_v49  ;;  %v2131_v19 = vadd.f32 %v3999_v59, %v2130_v55  ;;  %v2015_v13 = vmax.f32 %v1951_v18, %v1983_v9 }
 0x4f1   : > { %v1906_v47 = vpop.f32.mrf.mxu2 }
 0x4f2   : > { %v1907_v52 = vadd.f32 %v3945_v48, %v1906_v47  ;;  %v2204_v16 = vmul.f32 0.1, %v2131_v19 }
 0x4f4   : > { %v1952_v28 = vadd.f32 %v1907_v52, %v3889_v15  ;;  %v2236_v61 = vmax.f32 %v2131_v19, %v2204_v16 }
 0x4f6   : > { %v1984_v37 = vmul.f32 0.1, %v1952_v28 }
 0x4f7   : > { %v2132_v42 = vpop.f32.mrf.mxu3 }
 0x4f8   : > { %v2016_v10 = vmax.f32 %v1952_v28, %v1984_v37  ;;  %v2133_v56 = vadd.f32 %v3999_v59, %v2132_v42 }
 0x4f9   : > { %v1909_v12 = vpop.f32.mrf.mxu2 }
 0x4fa   : > { %v2205_v26 = vmul.f32 0.1, %v2133_v56  ;;  %v2036_v2 = vpack.c.bf16 %v2016_v10, %v2015_v13  ;;  %v1910_v62 = vadd.f32 %v3945_v48, %v1909_v12 }
 0x4fc   : > { %v2237_v17 = vmax.f32 %v2133_v56, %v2205_v26  ;;  %2174 = vmatmul.bf16.gmra.mxu3 %v2036_v2  ;;  %v1953_v36 = vadd.f32 %v1910_v62, %v3899_v34 }
 0x4fe   : > { %v2266_v8 = vpack.c.bf16 %v2237_v17, %v2236_v61  ;;  %v1985_v14 = vmul.f32 0.1, %v1953_v36 }
 0x4ff   : > { %v2135_v54 = vpop.f32.mrf.mxu3 }
 0x500   : > { %2368 = vmatmul.bf16.gmra.mxu0 %v2266_v8  ;;  %v2136_v27 = vadd.f32 %v3999_v59, %v2135_v54  ;;  %v2017_v24 = vmax.f32 %v1953_v36, %v1985_v14 }
 0x501   : > { %v1911_v15 = vpop.f32.mrf.mxu2 }
 0x502   : > { %v1912_v38 = vadd.f32 %v3945_v48, %v1911_v15  ;;  %v2206_v6 = vmul.f32 0.1, %v2136_v27 }
 0x504   : > { %v1954_v0 = vadd.f32 %v1912_v38, %v3901_v57  ;;  %v2238_v34 = vmax.f32 %v2136_v27, %v2206_v6 }
 0x506   : > { %v1986_v43 = vmul.f32 0.1, %v1954_v0 }
 0x507   : > { %v2137_v7 = vpop.f32.mrf.mxu3 }
 0x508   : > { %v2018_v39 = vmax.f32 %v1954_v0, %v1986_v43  ;;  %v2138_v22 = vadd.f32 %v3999_v59, %v2137_v7 }
 0x509   : > { %v1914_v29 = vpop.f32.mrf.mxu2 }
 0x50a   : > { %v2207_v20 = vmul.f32 0.1, %v2138_v22  ;;  %v2037_v58 = vpack.c.bf16 %v2018_v39, %v2017_v24  ;;  %v1915_v53 = vadd.f32 %v3945_v48, %v1914_v29 }
 0x50c   : > { %v2239_v1 = vmax.f32 %v2138_v22, %v2207_v20  ;;  %2179 = vmatmul.bf16.gmra.mxu3 %v2037_v58  ;;  %v1955_v3 = vadd.f32 %v1915_v53, %v3911_v5 }
 0x50e   : > { %v2267_v4 = vpack.c.bf16 %v2239_v1, %v2238_v34  ;;  %v1987_v40 = vmul.f32 0.1, %v1955_v3 }
 0x50f   : > { %v2140_v21 = vpop.f32.mrf.mxu3 }
 0x510   : > { %2373 = vmatmul.bf16.gmra.mxu0 %v2267_v4  ;;  %v2141_v45 = vadd.f32 %v3999_v59, %v2140_v21  ;;  %v2019_v41 = vmax.f32 %v1955_v3, %v1987_v40 }
 0x511   : > { %v1916_v57 = vpop.f32.mrf.mxu2 }
 0x512   : > { %v1917_v51 = vadd.f32 %v3945_v48, %v1916_v57  ;;  %v2208_v63 = vmul.f32 0.1, %v2141_v45 }
 0x514   : > { %v1956_v33 = vadd.f32 %v1917_v51, %v3913_v11  ;;  %v2240_v5 = vmax.f32 %v2141_v45, %v2208_v63  ;;  %v4045_v63 = vld [vmem:[#allocation7 + $0x8] ss:$0 sm:$0xff] }
 0x516   : > { %v1988_v30 = vmul.f32 0.1, %v1956_v33 }
 0x517   : > { %v2142_v31 = vpop.f32.mrf.mxu3 }
 0x518   : > { %v2020_v25 = vmax.f32 %v1956_v33, %v1988_v30  ;;  %v2143_v50 = vadd.f32 %v3999_v59, %v2142_v31 }
 0x519   : > { %v1919_v46 = vpop.f32.mrf.mxu2 }
 0x51a   : > { %v2209_v44 = vmul.f32 0.1, %v2143_v50  ;;  %v2038_v49 = vpack.c.bf16 %v2020_v25, %v2019_v41  ;;  %v1920_v18 = vadd.f32 %v3945_v48, %v1919_v46 }
 0x51c   : > { %v2241_v55 = vmax.f32 %v2143_v50, %v2209_v44  ;;  %2184 = vmatmul.bf16.gmra.mxu3 %v2038_v49  ;;  %v1957_v9 = vadd.f32 %v1920_v18, %v3923_v35 }
 0x51e   : > { %v2268_v47 = vpack.c.bf16 %v2241_v55, %v2240_v5  ;;  %v1989_v28 = vmul.f32 0.1, %v1957_v9 }
 0x51f   : > { %v2145_v52 = vpop.f32.mrf.mxu3 }
 0x520   : > { %2378 = vmatmul.bf16.gmra.mxu0 %v2268_v47  ;;  %v2146_v37 = vadd.f32 %v3999_v59, %v2145_v52  ;;  %v2021_v10 = vmax.f32 %v1957_v9, %v1989_v28 }
 0x521   : > { %v1921_v11 = vpop.f32.mrf.mxu2 }
 0x522   : > { %v1922_v19 = vadd.f32 %v3945_v48, %v1921_v11  ;;  %v2210_v56 = vmul.f32 0.1, %v2146_v37 }
 0x524   : > { %v1958_v42 = vadd.f32 %v1922_v19, %v3925_v60  ;;  %v2242_v35 = vmax.f32 %v2146_v37, %v2210_v56 }
 0x526   : > { %v1990_v13 = vmul.f32 0.1, %v1958_v42 }
 0x527   : > { %v2147_v16 = vpop.f32.mrf.mxu3 }
 0x528   : > { %v2022_v12 = vmax.f32 %v1958_v42, %v1990_v13  ;;  %v2148_v26 = vadd.f32 %v3999_v59, %v2147_v16 }
 0x529   : > { %v1924_v2 = vpop.f32.mrf.mxu2 }
 0x52a   : > { %v2211_v61 = vmul.f32 0.1, %v2148_v26  ;;  %v2039_v17 = vpack.c.bf16 %v2022_v12, %v2021_v10  ;;  %v1925_v8 = vadd.f32 %v3945_v48, %v1924_v2 }
 0x52c   : > { %v2243_v62 = vmax.f32 %v2148_v26, %v2211_v61  ;;  %2189 = vmatmul.bf16.gmra.mxu3 %v2039_v17  ;;  %v1959_v15 = vadd.f32 %v1925_v8, %v3935_v32 }
 0x52e   : > { %v2269_v54 = vpack.c.bf16 %v2243_v62, %v2242_v35  ;;  %v1991_v14 = vmul.f32 0.1, %v1959_v15 }
 0x52f   : > { %v2150_v36 = vpop.f32.mrf.mxu3 }
 0x530   : > { %2383 = vmatmul.bf16.gmra.mxu0 %v2269_v54  ;;  %v2151_v27 = vadd.f32 %v3999_v59, %v2150_v36  ;;  %v2023_v24 = vmax.f32 %v1959_v15, %v1991_v14 }
 0x531   : > { %v1926_v60 = vpop.f32.mrf.mxu2 }
 0x532   : > { %v1927_v38 = vadd.f32 %v3945_v48, %v1926_v60  ;;  %v2212_v6 = vmul.f32 0.1, %v2151_v27 }
 0x534   : > { %v1960_v0 = vadd.f32 %v1927_v38, %v3937_v23  ;;  %v2244_v58 = vmax.f32 %v2151_v27, %v2212_v6 }
 0x536   : > { %v1992_v43 = vmul.f32 0.1, %v1960_v0 }
 0x537   : > { %v2152_v7 = vpop.f32.mrf.mxu3 }
 0x538   : > { %v2024_v39 = vmax.f32 %v1960_v0, %v1992_v43  ;;  %v2153_v22 = vadd.f32 %v3999_v59, %v2152_v7 }
 0x53a   : > { %v2213_v29 = vmul.f32 0.1, %v2153_v22  ;;  %v2040_v20 = vpack.c.bf16 %v2024_v39, %v2023_v24 }
 0x53c   : > { %v2245_v32 = vmax.f32 %v2153_v22, %v2213_v29  ;;  %2194 = vmatmul.bf16.gmra.mxu3 %v2040_v20 }
 0x53e   : > { %v2270_v34 = vpack.c.bf16 %v2245_v32, %v2244_v58 }
 0x53f   : > { %v2155_v1 = vpop.f32.mrf.mxu3 }
 0x540   : > { %2388 = vmatmul.bf16.gmra.mxu0 %v2270_v34  ;;  %v2156_v48 = vadd.f32 %v3999_v59, %v2155_v1 }
 0x542   : > { %v2214_v4 = vmul.f32 0.1, %v2156_v48 }
 0x544   : > { %v2246_v3 = vmax.f32 %v2156_v48, %v2214_v4 }
 0x547   : > { %v2157_v53 = vpop.f32.mrf.mxu3 }
 0x548   : > { %v2158_v23 = vadd.f32 %v3999_v59, %v2157_v53 }
 0x54a   : > { %v2215_v21 = vmul.f32 0.1, %v2158_v23 }
 0x54c   : > { %v2247_v57 = vmax.f32 %v2158_v23, %v2215_v21 }
 0x54e   : > { %v2271_v51 = vpack.c.bf16 %v2247_v57, %v2246_v3 }
 0x54f   : > { %v2160_v40 = vpop.f32.mrf.mxu3 }
 0x550   : > { %2393 = vmatmul.bf16.gmra.mxu0 %v2271_v51  ;;  %v2161_v45 = vadd.f32 %v3999_v59, %v2160_v40 }
 0x552   : > { %v2216_v30 = vmul.f32 0.1, %v2161_v45 }
 0x554   : > { %v2248_v25 = vmax.f32 %v2161_v45, %v2216_v30 }
 0x557   : > { %v2162_v33 = vpop.f32.mrf.mxu3 }
 0x558   : > { %v2163_v31 = vadd.f32 %v3999_v59, %v2162_v33 }
 0x55a   : > { %v2217_v41 = vmul.f32 0.1, %v2163_v31 }
 0x55c   : > { %v2249_v50 = vmax.f32 %v2163_v31, %v2217_v41 }
 0x55d   : > { %v2359_v46 = vpop.f32.mrf.mxu0 }
 0x55e   : > { %v2360_v44 = vadd.f32 %v4045_v63, %v2359_v46  ;;  %v2272_v49 = vpack.c.bf16 %v2249_v50, %v2248_v25 }
 0x55f   : > { %v2165_v5 = vpop.f32.mrf.mxu3 }
 0x560   : > { %2439 = vst [vmem:[%s4050_s18] sm:$0xff] %v2360_v44  ;;  %2398 = vmatmul.bf16.gmra.mxu0 %v2272_v49  ;;  %v2166_v55 = vadd.f32 %v3999_v59, %v2165_v5 }
 0x562   : > { %v2218_v9 = vmul.f32 0.1, %v2166_v55 }
 0x564   : > { %v2250_v28 = vmax.f32 %v2166_v55, %v2218_v9 }
 0x565   : > { %v2361_v18 = vpop.f32.mrf.mxu0 }
 0x566   : > { %v2362_v47 = vadd.f32 %v4045_v63, %v2361_v18 }
 0x567   : > { %v2167_v52 = vpop.f32.mrf.mxu3 }
 0x568   : > { %2440 = vst [vmem:[%s4050_s18 + $0x8] sm:$0xff] %v2362_v47  ;;  %v2168_v11 = vadd.f32 %v3999_v59, %v2167_v52 }
 0x56a   : > { %v2219_v19 = vmul.f32 0.1, %v2168_v11 }
 0x56c   : > { %v2251_v37 = vmax.f32 %v2168_v11, %v2219_v19 }
 0x56d   : > { %v2364_v42 = vpop.f32.mrf.mxu0 }
 0x56e   : > { %v2365_v13 = vadd.f32 %v4045_v63, %v2364_v42  ;;  %v2273_v16 = vpack.c.bf16 %v2251_v37, %v2250_v28 }
 0x56f   : > { %v2170_v10 = vpop.f32.mrf.mxu3 }
 0x570   : > { %2441 = vst [vmem:[%s4050_s18 + $0x10] sm:$0xff] %v2365_v13  ;;  %2403 = vmatmul.bf16.gmra.mxu0 %v2273_v16  ;;  %v2171_v56 = vadd.f32 %v3999_v59, %v2170_v10 }
 0x572   : > { %v2220_v61 = vmul.f32 0.1, %v2171_v56 }
 0x574   : > { %v2252_v62 = vmax.f32 %v2171_v56, %v2220_v61 }
 0x575   : > { %v2366_v12 = vpop.f32.mrf.mxu0 }
 0x576   : > { %v2367_v26 = vadd.f32 %v4045_v63, %v2366_v12 }
 0x577   : > { %v2172_v2 = vpop.f32.mrf.mxu3 }
 0x578   : > { %2442 = vst [vmem:[%s4050_s18 + $0x18] sm:$0xff] %v2367_v26  ;;  %v2173_v17 = vadd.f32 %v3999_v59, %v2172_v2 }
 0x57a   : > { %v2221_v35 = vmul.f32 0.1, %v2173_v17 }
 0x57c   : > { %v2253_v8 = vmax.f32 %v2173_v17, %v2221_v35 }
 0x57d   : > { %v2369_v54 = vpop.f32.mrf.mxu0 }
 0x57e   : > { %v2370_v36 = vadd.f32 %v4045_v63, %v2369_v54  ;;  %v2274_v15 = vpack.c.bf16 %v2253_v8, %v2252_v62 }
 0x57f   : > { %v2175_v60 = vpop.f32.mrf.mxu3 }
 0x580   : > { %2443 = vst [vmem:[%s4050_s18 + $0x20] sm:$0xff] %v2370_v36  ;;  %2408 = vmatmul.bf16.gmra.mxu0 %v2274_v15  ;;  %v2176_v38 = vadd.f32 %v3999_v59, %v2175_v60 }
 0x582   : > { %v2222_v43 = vmul.f32 0.1, %v2176_v38 }
 0x584   : > { %v2254_v6 = vmax.f32 %v2176_v38, %v2222_v43 }
 0x585   : > { %v2371_v14 = vpop.f32.mrf.mxu0 }
 0x586   : > { %v2372_v27 = vadd.f32 %v4045_v63, %v2371_v14 }
 0x587   : > { %v2177_v0 = vpop.f32.mrf.mxu3 }
 0x588   : > { %2444 = vst [vmem:[%s4050_s18 + $0x28] sm:$0xff] %v2372_v27  ;;  %v2178_v7 = vadd.f32 %v3999_v59, %v2177_v0 }
 0x58a   : > { %v2223_v24 = vmul.f32 0.1, %v2178_v7 }
 0x58c   : > { %v2255_v39 = vmax.f32 %v2178_v7, %v2223_v24 }
 0x58d   : > { %v2374_v22 = vpop.f32.mrf.mxu0 }
 0x58e   : > { %v2375_v29 = vadd.f32 %v4045_v63, %v2374_v22  ;;  %v2275_v20 = vpack.c.bf16 %v2255_v39, %v2254_v6 }
 0x58f   : > { %v2180_v58 = vpop.f32.mrf.mxu3 }
 0x590   : > { %2445 = vst [vmem:[%s4050_s18 + $0x30] sm:$0xff] %v2375_v29  ;;  %2413 = vmatmul.bf16.gmra.mxu0 %v2275_v20  ;;  %v2181_v32 = vadd.f32 %v3999_v59, %v2180_v58 }
 0x592   : > { %v2224_v53 = vmul.f32 0.1, %v2181_v32 }
 0x594   : > { %v2256_v21 = vmax.f32 %v2181_v32, %v2224_v53 }
 0x595   : > { %v2376_v34 = vpop.f32.mrf.mxu0 }
 0x596   : > { %v2377_v1 = vadd.f32 %v4045_v63, %v2376_v34 }
 0x597   : > { %v2182_v48 = vpop.f32.mrf.mxu3 }
 0x598   : > { %2446 = vst [vmem:[%s4050_s18 + $0x38] sm:$0xff] %v2377_v1  ;;  %v2183_v4 = vadd.f32 %v3999_v59, %v2182_v48 }
 0x59a   : > { %v2225_v23 = vmul.f32 0.1, %v2183_v4 }
 0x59c   : > { %v2257_v3 = vmax.f32 %v2183_v4, %v2225_v23 }
 0x59d   : > { %v2379_v57 = vpop.f32.mrf.mxu0 }
 0x59e   : > { %v2380_v51 = vadd.f32 %v4045_v63, %v2379_v57  ;;  %v2276_v40 = vpack.c.bf16 %v2257_v3, %v2256_v21 }
 0x59f   : > { %v2185_v45 = vpop.f32.mrf.mxu3 }
 0x5a0   : > { %2447 = vst [vmem:[%s4050_s18 + $0x40] sm:$0xff] %v2380_v51  ;;  %2418 = vmatmul.bf16.gmra.mxu0 %v2276_v40  ;;  %v2186_v33 = vadd.f32 %v3999_v59, %v2185_v45 }
 0x5a2   : > { %v2226_v25 = vmul.f32 0.1, %v2186_v33 }
 0x5a4   : > { %v2258_v44 = vmax.f32 %v2186_v33, %v2226_v25 }
 0x5a5   : > { %v2381_v30 = vpop.f32.mrf.mxu0 }
 0x5a6   : > { %v2382_v31 = vadd.f32 %v4045_v63, %v2381_v30 }
 0x5a7   : > { %v2187_v41 = vpop.f32.mrf.mxu3 }
 0x5a8   : > { %2448 = vst [vmem:[%s4050_s18 + $0x48] sm:$0xff] %v2382_v31  ;;  %v2188_v50 = vadd.f32 %v3999_v59, %v2187_v41 }
 0x5aa   : > { %v2227_v46 = vmul.f32 0.1, %v2188_v50 }
 0x5ac   : > { %v2259_v49 = vmax.f32 %v2188_v50, %v2227_v46 }
 0x5ad   : > { %v2384_v5 = vpop.f32.mrf.mxu0 }
 0x5ae   : > { %v2385_v55 = vadd.f32 %v4045_v63, %v2384_v5  ;;  %v2277_v18 = vpack.c.bf16 %v2259_v49, %v2258_v44 }
 0x5af   : > { %v2190_v47 = vpop.f32.mrf.mxu3 }
 0x5b0   : > { %2449 = vst [vmem:[%s4050_s18 + $0x50] sm:$0xff] %v2385_v55  ;;  %2423 = vmatmul.bf16.gmra.mxu0 %v2277_v18  ;;  %v2191_v52 = vadd.f32 %v3999_v59, %v2190_v47 }
 0x5b2   : > { %v2228_v28 = vmul.f32 0.1, %v2191_v52 }
 0x5b4   : > { %v2260_v13 = vmax.f32 %v2191_v52, %v2228_v28 }
 0x5b5   : > { %v2386_v9 = vpop.f32.mrf.mxu0 }
 0x5b6   : > { %v2387_v11 = vadd.f32 %v4045_v63, %v2386_v9 }
 0x5b7   : > { %v2192_v19 = vpop.f32.mrf.mxu3 }
 0x5b8   : > { %2450 = vst [vmem:[%s4050_s18 + $0x58] sm:$0xff] %v2387_v11  ;;  %v2193_v37 = vadd.f32 %v3999_v59, %v2192_v19 }
 0x5ba   : > { %v2229_v42 = vmul.f32 0.1, %v2193_v37 }
 0x5bc   : > { %v2261_v16 = vmax.f32 %v2193_v37, %v2229_v42 }
 0x5bd   : > { %v2389_v10 = vpop.f32.mrf.mxu0 }
 0x5be   : > { %v2390_v56 = vadd.f32 %v4045_v63, %v2389_v10  ;;  %v2278_v12 = vpack.c.bf16 %v2261_v16, %v2260_v13 }
 0x5bf   : > { %v2195_v26 = vpop.f32.mrf.mxu3 }
 0x5c0   : > { %2451 = vst [vmem:[%s4050_s18 + $0x60] sm:$0xff] %v2390_v56  ;;  %2428 = vmatmul.bf16.gmra.mxu0 %v2278_v12  ;;  %v2196_v2 = vadd.f32 %v3999_v59, %v2195_v26 }
 0x5c2   : > { %v2230_v62 = vmul.f32 0.1, %v2196_v2 }
 0x5c4   : > { %v2262_v36 = vmax.f32 %v2196_v2, %v2230_v62 }
 0x5c5   : > { %v2391_v61 = vpop.f32.mrf.mxu0 }
 0x5c6   : > { %v2392_v17 = vadd.f32 %v4045_v63, %v2391_v61 }
 0x5c7   : > { %v2197_v35 = vpop.f32.mrf.mxu3 }
 0x5c8   : > { %2452 = vst [vmem:[%s4050_s18 + $0x68] sm:$0xff] %v2392_v17  ;;  %v2198_v8 = vadd.f32 %v3999_v59, %v2197_v35 }
 0x5ca   : > { %v2231_v54 = vmul.f32 0.1, %v2198_v8 }
 0x5cc   : > { %v2263_v15 = vmax.f32 %v2198_v8, %v2231_v54 }
 0x5cd   : > { %v2394_v60 = vpop.f32.mrf.mxu0 }
 0x5ce   : > { %v2395_v38 = vadd.f32 %v4045_v63, %v2394_v60  ;;  %v2279_v14 = vpack.c.bf16 %v2263_v15, %v2262_v36 }
 0x5d0   : > { %2453 = vst [vmem:[%s4050_s18 + $0x70] sm:$0xff] %v2395_v38  ;;  %2433 = vmatmul.bf16.gmra.mxu0 %v2279_v14 }
 0x5d5   : > { %v2396_v27 = vpop.f32.mrf.mxu0 }
 0x5d6   : > { %v2397_v0 = vadd.f32 %v4045_v63, %v2396_v27 }
 0x5d8   : > { %2454 = vst [vmem:[%s4050_s18 + $0x78] sm:$0xff] %v2397_v0 }
 0x5dd   : > { %v2399_v43 = vpop.f32.mrf.mxu0 }
 0x5de   : > { %v2400_v59 = vadd.f32 %v4045_v63, %v2399_v43 }
 0x5e0   : > { %2455 = vst [vmem:[%s4050_s18 + $0x80] sm:$0xff] %v2400_v59 }
 0x5e5   : > { %v2401_v7 = vpop.f32.mrf.mxu0 }
 0x5e6   : > { %v2402_v24 = vadd.f32 %v4045_v63, %v2401_v7 }
 0x5e8   : > { %2456 = vst [vmem:[%s4050_s18 + $0x88] sm:$0xff] %v2402_v24 }
 0x5ed   : > { %v2404_v6 = vpop.f32.mrf.mxu0 }
 0x5ee   : > { %v2405_v39 = vadd.f32 %v4045_v63, %v2404_v6 }
 0x5f0   : > { %2457 = vst [vmem:[%s4050_s18 + $0x90] sm:$0xff] %v2405_v39 }
 0x5f5   : > { %v2406_v22 = vpop.f32.mrf.mxu0 }
 0x5f6   : > { %v2407_v29 = vadd.f32 %v4045_v63, %v2406_v22 }
 0x5f8   : > { %2458 = vst [vmem:[%s4050_s18 + $0x98] sm:$0xff] %v2407_v29 }
 0x5fd   : > { %v2409_v20 = vpop.f32.mrf.mxu0 }
 0x5fe   : > { %v2410_v58 = vadd.f32 %v4045_v63, %v2409_v20 }
 0x600   : > { %2459 = vst [vmem:[%s4050_s18 + $0xa0] sm:$0xff] %v2410_v58 }
 0x605   : > { %v2411_v32 = vpop.f32.mrf.mxu0 }
 0x606   : > { %v2412_v34 = vadd.f32 %v4045_v63, %v2411_v32 }
 0x608   : > { %2460 = vst [vmem:[%s4050_s18 + $0xa8] sm:$0xff] %v2412_v34 }
 0x60d   : > { %v2414_v1 = vpop.f32.mrf.mxu0 }
 0x60e   : > { %v2415_v48 = vadd.f32 %v4045_v63, %v2414_v1 }
 0x610   : > { %2461 = vst [vmem:[%s4050_s18 + $0xb0] sm:$0xff] %v2415_v48 }
 0x615   : > { %v2416_v53 = vpop.f32.mrf.mxu0 }
 0x616   : > { %v2417_v4 = vadd.f32 %v4045_v63, %v2416_v53 }
 0x618   : > { %2462 = vst [vmem:[%s4050_s18 + $0xb8] sm:$0xff] %v2417_v4 }
 0x61d   : > { %v2419_v23 = vpop.f32.mrf.mxu0 }
 0x61e   : > { %v2420_v21 = vadd.f32 %v4045_v63, %v2419_v23 }
 0x620   : > { %2463 = vst [vmem:[%s4050_s18 + $0xc0] sm:$0xff] %v2420_v21 }
 0x625   : > { %v2421_v3 = vpop.f32.mrf.mxu0 }
 0x626   : > { %v2422_v57 = vadd.f32 %v4045_v63, %v2421_v3 }
 0x628   : > { %2464 = vst [vmem:[%s4050_s18 + $0xc8] sm:$0xff] %v2422_v57 }
 0x62d   : > { %v2424_v51 = vpop.f32.mrf.mxu0 }
 0x62e   : > { %v2425_v40 = vadd.f32 %v4045_v63, %v2424_v51 }
 0x630   : > { %2465 = vst [vmem:[%s4050_s18 + $0xd0] sm:$0xff] %v2425_v40 }
 0x635   : > { %v2426_v45 = vpop.f32.mrf.mxu0 }
 0x636   : > { %v2427_v33 = vadd.f32 %v4045_v63, %v2426_v45 }
 0x638   : > { %2466 = vst [vmem:[%s4050_s18 + $0xd8] sm:$0xff] %v2427_v33 }
 0x63d   : > { %v2429_v30 = vpop.f32.mrf.mxu0 }
 0x63e   : > { %v2430_v31 = vadd.f32 %v4045_v63, %v2429_v30 }
 0x640   : > { %2467 = vst [vmem:[%s4050_s18 + $0xe0] sm:$0xff] %v2430_v31 }
 0x645   : > { %v2431_v41 = vpop.f32.mrf.mxu0 }
 0x646   : > { %v2432_v25 = vadd.f32 %v4045_v63, %v2431_v41 }
 0x648   : > { %2468 = vst [vmem:[%s4050_s18 + $0xe8] sm:$0xff] %v2432_v25 }
 0x64d   : > { %v2434_v50 = vpop.f32.mrf.mxu0 }
 0x64e   : > { %v2435_v46 = vadd.f32 %v4045_v63, %v2434_v50 }
 0x650   : > { %2469 = vst [vmem:[%s4050_s18 + $0xf0] sm:$0xff] %v2435_v46 }
 0x655   : > { %v2436_v44 = vpop.f32.mrf.mxu0 }
 0x656   : > { %v2437_v49 = vadd.f32 %v4045_v63, %v2436_v44 }
 0x658   : > { %2470 = vst [vmem:[%s4050_s18 + $0xf8] sm:$0xff] %v2437_v49 }
 0x659   : > { %3184 = shalt.err (!%p3181_p10)
}
 0x65a   : > { %s3237_s25 = smov 128   ;;  %s3238_s26 = smov 8  }
 0x65b   : > { %2993 = dma.vmem_to_hbm [thread:$0]  (%p3328_p5), %s2485_s4, 4096, %s2487_s6, %s2472_s7, %s3237_s25, %s3237_s25, %s3238_s26  }
 0x65c PF: > { %s2501_s27 = sand.u32 1, %s3215_s12   ;;  %p4172_p12 = scmp.ge.s32.totalorder %s3227_s15, 2 }
 0x65d   : > { %s2502_s5 = scalar_lea.sflag [#allocation4], %s2501_s27 }
 0x65e   : > { %p3007_p13 = pnand %p4172_p12, %p3294_p6 }
 0x660   : > { %p3008_p0 = pneg %p3007_p13 }
 0x662   : > { %3210 = dma.done.wait (%p3008_p0), %s2502_s5, 4096  }
 0x663   : > { %3212 = vsyncadd (%p3008_p0), %s2502_s5, 4294963200  ;;  %p17_p3 = scmp.ge.s32.totalorder %s3315_s8, 4   ;;  %s4173_s12 = smov %s3219_s13 }
 0x664   : > { %s4174_s13 = smov %s3223_s14  ;;  %s4175_s14 = smov %s3324_s11 }
 0x665   : > { %s4176_s15 = smov %s3315_s8  ;;  %19 = sbr.rel (!%p17_p3) target bundleno = 6 (0x6), region = 101 }
 0x66a   :  { %2508 = vsyncpa [#allocation3], 1 }
 0x66b   :  { %2510 = vsyncpa [#allocation3 + $0x1], 1 }
 0x66c   :  { %2511 = vsyncpa [#allocation6], 1 }
 0x66d   :  { %2512 = vsyncpa [#allocation4], 1 }
 0x66e   :  { %2514 = vsyncpa [#allocation4 + $0x1], 1 }

</bundles_post_ra>
